<compile_context>
chip_gen: v7x
topology: tpu7x:2x2x1
jax: 0.10.0
libtpu: 0.0.40
codegen_flags: <defaults>
</compile_context>

<pallas_src>
import functools

import jax
import jax.numpy as jnp
from jax import lax
from jax.experimental import pallas as pl
from jax.experimental.pallas import tpu as pltpu


def _upsample_conv_kernel(TR, W, CK, OC,
                          xm_ref, xt_ref, xb_ref, wr_ref, b_ref,
                          o_ref, cs_ref, acc_ref):
    """One (batch n, row-tile r, channel-chunk kc) grid step.

    xm_ref : (1, TR, W, CK)  bf16  main TR input rows, this channel chunk
    xt_ref : (1, 1, W, CK)   bf16  row above the tile (clamped; masked at top)
    xb_ref : (1, 1, W, CK)   bf16  row below the tile (clamped; masked at bottom)
    wr_ref : (1, 2, 2, 3*CK, 2*OC) bf16 folded weights [kc][oy, row-tap, (dx,c), (ox,oc)]
    b_ref  : (1, 2*OC)       f32   bias tiled over ox
    o_ref  : (1, TR, 2, W, 2*OC) f32 output; dims = (n, row, oy, col, ox*OC+oc)
    cs_ref : VMEM (TR+2, W, 3*CK) bf16  3-column-tap stack with 1-row halo
    acc_ref: VMEM (2, TR*W, 2*OC) f32   per-phase accumulator over channel chunks
    """
    r = pl.program_id(1)
    n_r = pl.num_programs(1)
    kc = pl.program_id(2)
    n_kc = pl.num_programs(2)

    # ---- 1) build the 3-column-tap stack for this channel chunk ------------
    # cs[p, j, dx*CK + c] = x_pad[row(p), j + dx - 1, c]   (zero outside image)
    def put_rows(p0, nrows, src):
        z = jnp.zeros((nrows, 1, CK), jnp.bfloat16)
        cs_ref[p0:p0 + nrows, :, CK:2 * CK] = src                        # dx = 1
        cs_ref[p0:p0 + nrows, 1:W, 0:CK] = src[:, 0:W - 1, :]            # dx = 0
        cs_ref[p0:p0 + nrows, 0:1, 0:CK] = z
        cs_ref[p0:p0 + nrows, 0:W - 1, 2 * CK:3 * CK] = src[:, 1:W, :]   # dx = 2
        cs_ref[p0:p0 + nrows, W - 1:W, 2 * CK:3 * CK] = z

    put_rows(1, TR, xm_ref[0])

    # Halo rows: fill from the neighbor tile, or zero only at the image edge.
    @pl.when(r > 0)
    def _():
        put_rows(0, 1, xt_ref[0])

    @pl.when(r == 0)
    def _():
        cs_ref[0:1, :, :] = jnp.zeros((1, W, 3 * CK), jnp.bfloat16)

    @pl.when(r < n_r - 1)
    def _():
        put_rows(TR + 1, 1, xb_ref[0])

    @pl.when(r == n_r - 1)
    def _():
        cs_ref[TR + 1:TR + 2, :, :] = jnp.zeros((1, W, 3 * CK), jnp.bfloat16)

    # ---- 2) accumulate: 2 phases x 2 row taps, K = 3*CK per matmul ---------
    @pl.when(kc == 0)
    def _():
        acc_ref[...] = jnp.zeros_like(acc_ref)

    for oy in range(2):
        acc = acc_ref[oy, :, :]
        for a in range(2):                                   # row tap
            lhs = cs_ref[oy + a:oy + a + TR, :, :].reshape(TR * W, 3 * CK)
            acc = acc + jnp.dot(lhs, wr_ref[0, oy, a, :, :],
                                preferred_element_type=jnp.float32)
        acc_ref[oy, :, :] = acc

    # ---- 3) finalize on the last channel chunk -----------------------------
    @pl.when(kc == n_kc - 1)
    def _():
        bias = b_ref[0, :]
        for oy in range(2):
            res = acc_ref[oy, :, :].reshape(TR, W, 2 * OC) + bias[None, None, :]
            o_ref[0, :, oy, :, :] = res.astype(o_ref.dtype)


def upsample_forward(x_nchw, w_pt, bias, *, use_conv=True, ck=None,
                     channels_last_out=False):
    """Equivalent of Upsample(channels, use_conv, dims=2).forward (NCHW in/out).

    x_nchw: (N, C, H, W) float32
    w_pt  : (OC, C, 3, 3) float32 (PyTorch Conv2d weight layout)
    bias  : (OC,) float32
    ck    : optional input-channel chunk size (K tile); auto-chosen if None.
    returns (N, OC, 2H, 2W) float32  (or NHWC if channels_last_out=True)
    """
    N, C, H, W = x_nchw.shape

    if not use_conv:
        # Pure nearest upsample (memory-bound, no hot-path compute) -- plain JAX.
        return jnp.repeat(jnp.repeat(x_nchw, 2, axis=2), 2, axis=3)

    OC = w_pt.shape[0]

    # ---- channel-chunk (K-tile) selection; chunks must stay lane-aligned ----
    if ck is None:
        ck = C
        if C > 256 and C % 128 == 0:
            ck = 256 if C % 256 == 0 else 128
        # TODO(synk): zero-pad C to a multiple of 128 when C is large but has
        # no 128-multiple divisor (e.g. C=320) so it can still be chunked.
    assert C % ck == 0 and (ck == C or ck % 128 == 0), (C, ck)
    n_kc = C // ck

    # ---- device-derived VMEM budget and row-tile size ----------------------
    try:
        vmem_cap = int(pltpu.get_tpu_info().vmem_capacity_bytes)
    except Exception:
        vmem_cap = 64 * 1024 * 1024        # conservative (v7x-sized) fallback
    vmem_limit = min(int(vmem_cap * 0.75), 112 * 1024 * 1024)

    def vmem_est(tr):
        in_b = 2 * (tr + 2) * W * ck * 2             # double-buffered bf16 inputs
        w_b = 2 * (2 * 2 * 3 * ck) * (2 * OC) * 2    # (worst case) 2x bf16 weights
        out_b = 2 * tr * 2 * W * 2 * OC * 4          # double-buffered f32 output
        cs_b = (tr + 2) * W * 3 * ck * 2             # column-tap scratch
        acc_b = 2 * tr * W * 2 * OC * 4              # f32 accumulator scratch
        return in_b + w_b + out_b + cs_b + acc_b + 2 * OC * 4

    TR = None
    for cand in (32, 16, 8):                         # biggest divisor of H that fits
        if H % cand == 0 and vmem_est(cand) <= int(0.6 * vmem_limit):
            TR = cand
            break
    if TR is None:
        TR = 8 if H % 8 == 0 else H
    n_r = H // TR

    # ---- glue: layout + parameter folding (input-sized; plain JAX) ---------
    x_nhwc = jnp.transpose(x_nchw, (0, 2, 3, 1)).astype(jnp.bfloat16)   # (N,H,W,C)

    w_hwio = jnp.transpose(w_pt, (2, 3, 1, 0)).astype(jnp.float32)      # (3,3,C,OC)
    # M[phase, tap, k]: which original 3-taps fold into each 2x2 phase tap.
    M = jnp.array([[[1., 0., 0.],
                    [0., 1., 1.]],
                   [[1., 1., 0.],
                    [0., 0., 1.]]], dtype=jnp.float32)                  # (2,2,3)
    weff = jnp.einsum('oad,pbe,decf->opabcf', M, M, w_hwio)             # (oy,ox,a,b,C,OC)
    # wr6[oy, a, dx, c, ox, oc]: dx is the column tap of the 3-wide column stack.
    wr6 = jnp.zeros((2, 2, 3, C, 2, OC), jnp.float32)
    for ox in range(2):
        for b in range(2):
            wr6 = wr6.at[:, :, ox + b, :, ox, :].set(weff[:, ox, :, b, :, :])
    # Chunk the contraction over input channels: (kc, oy, a, 3*ck, 2*OC), bf16.
    wr = wr6.reshape(2, 2, 3, n_kc, ck, 2 * OC)
    wr = jnp.transpose(wr, (3, 0, 1, 2, 4, 5)).reshape(n_kc, 2, 2, 3 * ck, 2 * OC)
    wr = wr.astype(jnp.bfloat16)
    b2 = jnp.tile(bias.astype(jnp.float32), 2).reshape(1, 2 * OC)

    # Grid-invariant blocks do not need double buffering.
    w_pipeline = pl.Buffered(1) if n_kc == 1 else None

    # ---- hot path: Pallas kernel --------------------------------------------
    kernel = functools.partial(_upsample_conv_kernel, TR, W, ck, OC)
    out5 = pl.pallas_call(
        kernel,
        out_shape=jax.ShapeDtypeStruct((N, H, 2, W, 2 * OC), jnp.float32),
        grid_spec=pltpu.PrefetchScalarGridSpec(
            num_scalar_prefetch=0,
            grid=(N, n_r, n_kc),
            in_specs=[
                # main TR rows, this channel chunk
                pl.BlockSpec((1, TR, W, ck), lambda n, r, k: (n, r, 0, k)),
                # 1-row top halo (clamped at the edge, masked in-kernel)
                pl.BlockSpec((1, 1, W, ck),
                             lambda n, r, k: (n, jnp.maximum(r * TR - 1, 0), 0, k)),
                # 1-row bottom halo (clamped at the edge, masked in-kernel)
                pl.BlockSpec((1, 1, W, ck),
                             lambda n, r, k: (n, jnp.minimum(r * TR + TR, H - 1), 0, k)),
                # folded weight chunk (single-buffered when grid-invariant)
                pl.BlockSpec((1, 2, 2, 3 * ck, 2 * OC),
                             lambda n, r, k: (k, 0, 0, 0, 0),
                             pipeline_mode=w_pipeline),
                # bias, resident across the whole grid
                pl.BlockSpec((1, 2 * OC), lambda n, r, k: (0, 0),
                             pipeline_mode=pl.Buffered(1)),
            ],
            out_specs=pl.BlockSpec((1, TR, 2, W, 2 * OC),
                                   lambda n, r, k: (n, r, 0, 0, 0)),
            scratch_shapes=[
                pltpu.VMEM((TR + 2, W, 3 * ck), jnp.bfloat16),   # column-tap stack
                pltpu.VMEM((2, TR * W, 2 * OC), jnp.float32),    # per-phase accumulator
            ],
        ),
        compiler_params=pltpu.CompilerParams(
            dimension_semantics=("parallel", "parallel", "arbitrary"),
            vmem_limit_bytes=vmem_limit,
        ),
    )(x_nhwc, x_nhwc, x_nhwc, wr, b2)

    # (N, H, 2, W, 2*OC) has the exact memory layout of NHWC (N, 2H, 2W, OC):
    # this reshape is free (no data movement).
    out_nhwc = out5.reshape(N, 2 * H, 2 * W, OC)
    if channels_last_out:
        return out_nhwc       # avoids the output-sized transpose for NHWC consumers
    # Module contract returns NCHW; this is the only output-sized transpose left.
    return jnp.transpose(out_nhwc, (0, 3, 1, 2))


def _reference(x_nchw, w_pt, bias):
    """Pure-JAX reference matching the PyTorch forward (nearest x2 + conv3x3)."""
    up = jnp.repeat(jnp.repeat(x_nchw, 2, axis=2), 2, axis=3)
    out = lax.conv_general_dilated(
        up, w_pt,
        window_strides=(1, 1),
        padding=((1, 1), (1, 1)),
        dimension_numbers=('NCHW', 'OIHW', 'NCHW'),
        precision=lax.Precision.HIGHEST,
    )
    return out + bias[None, :, None, None]


def _run_case(key, N, C, H, W, OC, ck=None):
    kx, kw, kb = jax.random.split(key, 3)
    x = jax.random.normal(kx, (N, C, H, W), dtype=jnp.float32)

    # Deterministic Conv2d-style init (uniform +/- 1/sqrt(fan_in)).
    fan_in = C * 3 * 3
    bound = 1.0 / (fan_in ** 0.5)
    w_pt = jax.random.uniform(kw, (OC, C, 3, 3), jnp.float32, -bound, bound)
    bias = jax.random.uniform(kb, (OC,), jnp.float32, -bound, bound)

    out = jax.block_until_ready(upsample_forward(x, w_pt, bias, use_conv=True, ck=ck))
    ref = jax.block_until_ready(_reference(x, w_pt, bias))
    assert out.shape == (N, OC, 2 * H, 2 * W), out.shape
    err = float(jnp.max(jnp.abs(out - ref)))
    # bf16 operands + f32 accumulation: not bit-exact with the f32 HIGHEST-
    # precision reference, so use a bf16-level tolerance.
    assert err < 5e-2, err

    # use_conv=False path (pure nearest upsample, plain JAX).
    out_nc = jax.block_until_ready(upsample_forward(x, w_pt, bias, use_conv=False))
    ref_nc = jnp.repeat(jnp.repeat(x, 2, axis=2), 2, axis=3)
    assert jnp.array_equal(out_nc, ref_nc)


if __name__ == "__main__":
    key = jax.random.PRNGKey(0)
    k1, k2, k3 = jax.random.split(key, 3)
    # Module config from the spec: Upsample(channels=4, use_conv=True, dims=2).
    _run_case(k1, N=2, C=4, H=16, W=16, OC=4)
    # out_channels != channels, single row tile (exercises both edge masks).
    _run_case(k2, N=1, C=8, H=8, W=8, OC=4)
    # Wider channels with a forced K chunk (exercises the channel-chunk
    # accumulation path with lane-aligned chunks).
    _run_case(k3, N=1, C=256, H=8, W=8, OC=8, ck=128)
    print("KERNEL_OK")
</pallas_src>

<mosaic_0001>
module attributes {stable_mosaic.version = 11 : i64} {
  func.func @_upsample_conv_kernel(%arg0: i32, %arg1: i32, %arg2: i32, %arg3: memref<1x16x16x4xbf16, #tpu.memory_space<vmem>>, %arg4: memref<1x1x16x4xbf16, #tpu.memory_space<vmem>>, %arg5: memref<1x1x16x4xbf16, #tpu.memory_space<vmem>>, %arg6: memref<1x2x2x12x8xbf16, #tpu.memory_space<vmem>>, %arg7: memref<1x8xf32, #tpu.memory_space<vmem>>, %arg8: memref<1x16x2x16x8xf32, #tpu.memory_space<vmem>>, %arg9: memref<18x16x12xbf16, #tpu.memory_space<vmem>>, %arg10: memref<2x256x8xf32, #tpu.memory_space<vmem>>) attributes {dimension_semantics = [#tpu.dimension_semantics<parallel>, #tpu.dimension_semantics<parallel>, #tpu.dimension_semantics<arbitrary>], iteration_bounds = array<i64: 2, 1, 1>, scalar_prefetch = 0 : i64, scratch_operands = 2 : i64, tpu.core_type = #tpu.core_type<tc>, window_params = [{transform_indices = @transform_0, window_bounds = array<i64: 1, 16, 16, 4>}, {transform_indices = @transform_1, window_bounds = array<i64: 1, 1, 16, 4>}, {transform_indices = @transform_2, window_bounds = array<i64: 1, 1, 16, 4>}, {pipeline_mode = #tpu.pipeline_mode<synchronous>, transform_indices = @transform_3, window_bounds = array<i64: 1, 2, 2, 12, 8>}, {pipeline_mode = #tpu.pipeline_mode<synchronous>, transform_indices = @transform_4, window_bounds = array<i64: 1, 8>}, {transform_indices = @transform_5, window_bounds = array<i64: 1, 16, 2, 16, 8>}]} {
    %c0 = arith.constant 0 : index
    %c0_0 = arith.constant 0 : index
    %c0_1 = arith.constant 0 : index
    %c0_2 = arith.constant 0 : index
    %0 = vector.load %arg3[%c0, %c0_0, %c0_1, %c0_2] : memref<1x16x16x4xbf16, #tpu.memory_space<vmem>>, vector<1x16x16x4xbf16>
    %1 = vector.shape_cast %0 : vector<1x16x16x4xbf16> to vector<16x16x4xbf16>
    %cst = arith.constant 0.000000e+00 : bf16
    %2 = vector.broadcast %cst : bf16 to vector<16x1x4xbf16>
    %c1 = arith.constant 1 : index
    %c0_3 = arith.constant 0 : index
    %c4 = arith.constant 4 : index
    %3 = vector.load %arg9[%c1, %c0_3, %c4] : memref<18x16x12xbf16, #tpu.memory_space<vmem>>, vector<16x16x4xbf16>
    tpu.vector_store %arg9[%c1, %c0_3, %c4], %1 {strides = array<i32>} : memref<18x16x12xbf16, #tpu.memory_space<vmem>>, vector<16x16x4xbf16>,
    %4 = vector.extract_strided_slice %1 {offsets = [0, 0, 0], sizes = [16, 15, 4], strides = [1, 1, 1]} : vector<16x16x4xbf16> to vector<16x15x4xbf16>
    %c1_4 = arith.constant 1 : index
    %c1_5 = arith.constant 1 : index
    %c0_6 = arith.constant 0 : index
    %5 = vector.load %arg9[%c1_4, %c1_5, %c0_6] : memref<18x16x12xbf16, #tpu.memory_space<vmem>>, vector<16x15x4xbf16>
    tpu.vector_store %arg9[%c1_4, %c1_5, %c0_6], %4 {strides = array<i32>} : memref<18x16x12xbf16, #tpu.memory_space<vmem>>, vector<16x15x4xbf16>,
    %c1_7 = arith.constant 1 : index
    %c0_8 = arith.constant 0 : index
    %c0_9 = arith.constant 0 : index
    %6 = vector.load %arg9[%c1_7, %c0_8, %c0_9] : memref<18x16x12xbf16, #tpu.memory_space<vmem>>, vector<16x1x4xbf16>
    tpu.vector_store %arg9[%c1_7, %c0_8, %c0_9], %2 {strides = array<i32>} : memref<18x16x12xbf16, #tpu.memory_space<vmem>>, vector<16x1x4xbf16>,
    %7 = vector.extract_strided_slice %1 {offsets = [0, 1, 0], sizes = [16, 15, 4], strides = [1, 1, 1]} : vector<16x16x4xbf16> to vector<16x15x4xbf16>
    %c1_10 = arith.constant 1 : index
    %c0_11 = arith.constant 0 : index
    %c8 = arith.constant 8 : index
    %8 = vector.load %arg9[%c1_10, %c0_11, %c8] : memref<18x16x12xbf16, #tpu.memory_space<vmem>>, vector<16x15x4xbf16>
    tpu.vector_store %arg9[%c1_10, %c0_11, %c8], %7 {strides = array<i32>} : memref<18x16x12xbf16, #tpu.memory_space<vmem>>, vector<16x15x4xbf16>,
    %c1_12 = arith.constant 1 : index
    %c15 = arith.constant 15 : index
    %c8_13 = arith.constant 8 : index
    %9 = vector.load %arg9[%c1_12, %c15, %c8_13] : memref<18x16x12xbf16, #tpu.memory_space<vmem>>, vector<16x1x4xbf16>
    tpu.vector_store %arg9[%c1_12, %c15, %c8_13], %2 {strides = array<i32>} : memref<18x16x12xbf16, #tpu.memory_space<vmem>>, vector<16x1x4xbf16>,
    %c0_i32 = arith.constant 0 : i32
    %10 = arith.cmpi sgt, %arg1, %c0_i32 : i32
    %11 = arith.extui %10 : i1 to i32
    %c0_i32_14 = arith.constant 0 : i32
    %12 = arith.cmpi ne, %11, %c0_i32_14 : i32
    scf.if %12 {
      %c0_72 = arith.constant 0 : index
      %c0_73 = arith.constant 0 : index
      %c0_74 = arith.constant 0 : index
      %c0_75 = arith.constant 0 : index
      %62 = vector.load %arg4[%c0_72, %c0_73, %c0_74, %c0_75] : memref<1x1x16x4xbf16, #tpu.memory_space<vmem>>, vector<1x1x16x4xbf16>
      %63 = vector.shape_cast %62 : vector<1x1x16x4xbf16> to vector<1x16x4xbf16>
      %cst_76 = arith.constant 0.000000e+00 : bf16
      %64 = vector.broadcast %cst_76 : bf16 to vector<1x1x4xbf16>
      %c0_77 = arith.constant 0 : index
      %c0_78 = arith.constant 0 : index
      %c4_79 = arith.constant 4 : index
      %65 = vector.load %arg9[%c0_77, %c0_78, %c4_79] : memref<18x16x12xbf16, #tpu.memory_space<vmem>>, vector<1x16x4xbf16>
      tpu.vector_store %arg9[%c0_77, %c0_78, %c4_79], %63 {strides = array<i32>} : memref<18x16x12xbf16, #tpu.memory_space<vmem>>, vector<1x16x4xbf16>,
      %66 = vector.extract_strided_slice %63 {offsets = [0, 0, 0], sizes = [1, 15, 4], strides = [1, 1, 1]} : vector<1x16x4xbf16> to vector<1x15x4xbf16>
      %c0_80 = arith.constant 0 : index
      %c1_81 = arith.constant 1 : index
      %c0_82 = arith.constant 0 : index
      %67 = vector.load %arg9[%c0_80, %c1_81, %c0_82] : memref<18x16x12xbf16, #tpu.memory_space<vmem>>, vector<1x15x4xbf16>
      tpu.vector_store %arg9[%c0_80, %c1_81, %c0_82], %66 {strides = array<i32>} : memref<18x16x12xbf16, #tpu.memory_space<vmem>>, vector<1x15x4xbf16>,
      %c0_83 = arith.constant 0 : index
      %c0_84 = arith.constant 0 : index
      %c0_85 = arith.constant 0 : index
      %68 = vector.load %arg9[%c0_83, %c0_84, %c0_85] : memref<18x16x12xbf16, #tpu.memory_space<vmem>>, vector<1x1x4xbf16>
      tpu.vector_store %arg9[%c0_83, %c0_84, %c0_85], %64 {strides = array<i32>} : memref<18x16x12xbf16, #tpu.memory_space<vmem>>, vector<1x1x4xbf16>,
      %69 = vector.extract_strided_slice %63 {offsets = [0, 1, 0], sizes = [1, 15, 4], strides = [1, 1, 1]} : vector<1x16x4xbf16> to vector<1x15x4xbf16>
      %c0_86 = arith.constant 0 : index
      %c0_87 = arith.constant 0 : index
      %c8_88 = arith.constant 8 : index
      %70 = vector.load %arg9[%c0_86, %c0_87, %c8_88] : memref<18x16x12xbf16, #tpu.memory_space<vmem>>, vector<1x15x4xbf16>
      tpu.vector_store %arg9[%c0_86, %c0_87, %c8_88], %69 {strides = array<i32>} : memref<18x16x12xbf16, #tpu.memory_space<vmem>>, vector<1x15x4xbf16>,
      %c0_89 = arith.constant 0 : index
      %c15_90 = arith.constant 15 : index
      %c8_91 = arith.constant 8 : index
      %71 = vector.load %arg9[%c0_89, %c15_90, %c8_91] : memref<18x16x12xbf16, #tpu.memory_space<vmem>>, vector<1x1x4xbf16>
      tpu.vector_store %arg9[%c0_89, %c15_90, %c8_91], %64 {strides = array<i32>} : memref<18x16x12xbf16, #tpu.memory_space<vmem>>, vector<1x1x4xbf16>,
    } else {
    }
    %c0_i32_15 = arith.constant 0 : i32
    %13 = arith.cmpi eq, %arg1, %c0_i32_15 : i32
    %14 = arith.extui %13 : i1 to i32
    %c0_i32_16 = arith.constant 0 : i32
    %15 = arith.cmpi ne, %14, %c0_i32_16 : i32
    scf.if %15 {
      %cst_72 = arith.constant 0.000000e+00 : bf16
      %62 = vector.broadcast %cst_72 : bf16 to vector<1x16x12xbf16>
      %c0_73 = arith.constant 0 : index
      %c0_74 = arith.constant 0 : index
      %c0_75 = arith.constant 0 : index
      %63 = vector.load %arg9[%c0_73, %c0_74, %c0_75] : memref<18x16x12xbf16, #tpu.memory_space<vmem>>, vector<1x16x12xbf16>
      tpu.vector_store %arg9[%c0_73, %c0_74, %c0_75], %62 {strides = array<i32>} : memref<18x16x12xbf16, #tpu.memory_space<vmem>>, vector<1x16x12xbf16>,
    } else {
    }
    %c0_i32_17 = arith.constant 0 : i32
    %16 = arith.cmpi slt, %arg1, %c0_i32_17 : i32
    %17 = arith.extui %16 : i1 to i32
    %c0_i32_18 = arith.constant 0 : i32
    %18 = arith.cmpi ne, %17, %c0_i32_18 : i32
    scf.if %18 {
      %c0_72 = arith.constant 0 : index
      %c0_73 = arith.constant 0 : index
      %c0_74 = arith.constant 0 : index
      %c0_75 = arith.constant 0 : index
      %62 = vector.load %arg5[%c0_72, %c0_73, %c0_74, %c0_75] : memref<1x1x16x4xbf16, #tpu.memory_space<vmem>>, vector<1x1x16x4xbf16>
      %63 = vector.shape_cast %62 : vector<1x1x16x4xbf16> to vector<1x16x4xbf16>
      %cst_76 = arith.constant 0.000000e+00 : bf16
      %64 = vector.broadcast %cst_76 : bf16 to vector<1x1x4xbf16>
      %c17 = arith.constant 17 : index
      %c0_77 = arith.constant 0 : index
      %c4_78 = arith.constant 4 : index
      %65 = vector.load %arg9[%c17, %c0_77, %c4_78] : memref<18x16x12xbf16, #tpu.memory_space<vmem>>, vector<1x16x4xbf16>
      tpu.vector_store %arg9[%c17, %c0_77, %c4_78], %63 {strides = array<i32>} : memref<18x16x12xbf16, #tpu.memory_space<vmem>>, vector<1x16x4xbf16>,
      %66 = vector.extract_strided_slice %63 {offsets = [0, 0, 0], sizes = [1, 15, 4], strides = [1, 1, 1]} : vector<1x16x4xbf16> to vector<1x15x4xbf16>
      %c17_79 = arith.constant 17 : index
      %c1_80 = arith.constant 1 : index
      %c0_81 = arith.constant 0 : index
      %67 = vector.load %arg9[%c17_79, %c1_80, %c0_81] : memref<18x16x12xbf16, #tpu.memory_space<vmem>>, vector<1x15x4xbf16>
      tpu.vector_store %arg9[%c17_79, %c1_80, %c0_81], %66 {strides = array<i32>} : memref<18x16x12xbf16, #tpu.memory_space<vmem>>, vector<1x15x4xbf16>,
      %c17_82 = arith.constant 17 : index
      %c0_83 = arith.constant 0 : index
      %c0_84 = arith.constant 0 : index
      %68 = vector.load %arg9[%c17_82, %c0_83, %c0_84] : memref<18x16x12xbf16, #tpu.memory_space<vmem>>, vector<1x1x4xbf16>
      tpu.vector_store %arg9[%c17_82, %c0_83, %c0_84], %64 {strides = array<i32>} : memref<18x16x12xbf16, #tpu.memory_space<vmem>>, vector<1x1x4xbf16>,
      %69 = vector.extract_strided_slice %63 {offsets = [0, 1, 0], sizes = [1, 15, 4], strides = [1, 1, 1]} : vector<1x16x4xbf16> to vector<1x15x4xbf16>
      %c17_85 = arith.constant 17 : index
      %c0_86 = arith.constant 0 : index
      %c8_87 = arith.constant 8 : index
      %70 = vector.load %arg9[%c17_85, %c0_86, %c8_87] : memref<18x16x12xbf16, #tpu.memory_space<vmem>>, vector<1x15x4xbf16>
      tpu.vector_store %arg9[%c17_85, %c0_86, %c8_87], %69 {strides = array<i32>} : memref<18x16x12xbf16, #tpu.memory_space<vmem>>, vector<1x15x4xbf16>,
      %c17_88 = arith.constant 17 : index
      %c15_89 = arith.constant 15 : index
      %c8_90 = arith.constant 8 : index
      %71 = vector.load %arg9[%c17_88, %c15_89, %c8_90] : memref<18x16x12xbf16, #tpu.memory_space<vmem>>, vector<1x1x4xbf16>
      tpu.vector_store %arg9[%c17_88, %c15_89, %c8_90], %64 {strides = array<i32>} : memref<18x16x12xbf16, #tpu.memory_space<vmem>>, vector<1x1x4xbf16>,
    } else {
    }
    %c0_i32_19 = arith.constant 0 : i32
    %19 = arith.cmpi eq, %arg1, %c0_i32_19 : i32
    %20 = arith.extui %19 : i1 to i32
    %c0_i32_20 = arith.constant 0 : i32
    %21 = arith.cmpi ne, %20, %c0_i32_20 : i32
    scf.if %21 {
      %cst_72 = arith.constant 0.000000e+00 : bf16
      %62 = vector.broadcast %cst_72 : bf16 to vector<1x16x12xbf16>
      %c17 = arith.constant 17 : index
      %c0_73 = arith.constant 0 : index
      %c0_74 = arith.constant 0 : index
      %63 = vector.load %arg9[%c17, %c0_73, %c0_74] : memref<18x16x12xbf16, #tpu.memory_space<vmem>>, vector<1x16x12xbf16>
      tpu.vector_store %arg9[%c17, %c0_73, %c0_74], %62 {strides = array<i32>} : memref<18x16x12xbf16, #tpu.memory_space<vmem>>, vector<1x16x12xbf16>,
    } else {
    }
    %c0_i32_21 = arith.constant 0 : i32
    %22 = arith.cmpi eq, %arg2, %c0_i32_21 : i32
    %23 = arith.extui %22 : i1 to i32
    %c0_i32_22 = arith.constant 0 : i32
    %24 = arith.cmpi ne, %23, %c0_i32_22 : i32
    scf.if %24 {
      %cst_72 = arith.constant 0.000000e+00 : f32
      %62 = vector.broadcast %cst_72 : f32 to vector<2x256x8xf32>
      %c0_73 = arith.constant 0 : index
      %c0_74 = arith.constant 0 : index
      %c0_75 = arith.constant 0 : index
      %63 = vector.load %arg10[%c0_73, %c0_74, %c0_75] : memref<2x256x8xf32, #tpu.memory_space<vmem>>, vector<2x256x8xf32>
      tpu.vector_store %arg10[%c0_73, %c0_74, %c0_75], %62 {strides = array<i32>} : memref<2x256x8xf32, #tpu.memory_space<vmem>>, vector<2x256x8xf32>,
    } else {
    }
    %c0_23 = arith.constant 0 : index
    %c0_24 = arith.constant 0 : index
    %c0_25 = arith.constant 0 : index
    %25 = vector.load %arg10[%c0_23, %c0_24, %c0_25] : memref<2x256x8xf32, #tpu.memory_space<vmem>>, vector<1x256x8xf32>
    %26 = vector.shape_cast %25 : vector<1x256x8xf32> to vector<256x8xf32>
    %c0_26 = arith.constant 0 : index
    %c0_27 = arith.constant 0 : index
    %c0_28 = arith.constant 0 : index
    %27 = vector.load %arg9[%c0_26, %c0_27, %c0_28] : memref<18x16x12xbf16, #tpu.memory_space<vmem>>, vector<16x16x12xbf16>
    %28 = vector.shape_cast %27 : vector<16x16x12xbf16> to vector<256x12xbf16>
    %c0_29 = arith.constant 0 : index
    %c0_30 = arith.constant 0 : index
    %c0_31 = arith.constant 0 : index
    %c0_32 = arith.constant 0 : index
    %c0_33 = arith.constant 0 : index
    %29 = vector.load %arg6[%c0_29, %c0_30, %c0_31, %c0_32, %c0_33] : memref<1x2x2x12x8xbf16, #tpu.memory_space<vmem>>, vector<1x1x1x12x8xbf16>
    %30 = vector.shape_cast %29 : vector<1x1x1x12x8xbf16> to vector<12x8xbf16>
    %cst_34 = arith.constant dense<0.000000e+00> : vector<256x8xf32>
    %31 = tpu.matmul %28, %30, %cst_34 {dimension_numbers = #tpu.dot_dimension_numbers<[1], [0], [0], [1], [0, 0, 1, 1], [], []>} : vector<256x12xbf16>, vector<12x8xbf16>, vector<256x8xf32> -> vector<256x8xf32>
    %32 = arith.addf %26, %31 : vector<256x8xf32>
    %c1_35 = arith.constant 1 : index
    %c0_36 = arith.constant 0 : index
    %c0_37 = arith.constant 0 : index
    %33 = vector.load %arg9[%c1_35, %c0_36, %c0_37] : memref<18x16x12xbf16, #tpu.memory_space<vmem>>, vector<16x16x12xbf16>
    %34 = vector.shape_cast %33 : vector<16x16x12xbf16> to vector<256x12xbf16>
    %c0_38 = arith.constant 0 : index
    %c0_39 = arith.constant 0 : index
    %c1_40 = arith.constant 1 : index
    %c0_41 = arith.constant 0 : index
    %c0_42 = arith.constant 0 : index
    %35 = vector.load %arg6[%c0_38, %c0_39, %c1_40, %c0_41, %c0_42] : memref<1x2x2x12x8xbf16, #tpu.memory_space<vmem>>, vector<1x1x1x12x8xbf16>
    %36 = vector.shape_cast %35 : vector<1x1x1x12x8xbf16> to vector<12x8xbf16>
    %cst_43 = arith.constant dense<0.000000e+00> : vector<256x8xf32>
    %37 = tpu.matmul %34, %36, %cst_43 {dimension_numbers = #tpu.dot_dimension_numbers<[1], [0], [0], [1], [0, 0, 1, 1], [], []>} : vector<256x12xbf16>, vector<12x8xbf16>, vector<256x8xf32> -> vector<256x8xf32>
    %38 = arith.addf %32, %37 : vector<256x8xf32>
    %c0_44 = arith.constant 0 : index
    %c0_45 = arith.constant 0 : index
    %c0_46 = arith.constant 0 : index
    %39 = vector.load %arg10[%c0_44, %c0_45, %c0_46] : memref<2x256x8xf32, #tpu.memory_space<vmem>>, vector<1x256x8xf32>
    %40 = vector.shape_cast %39 : vector<1x256x8xf32> to vector<256x8xf32>
    %41 = vector.shape_cast %38 : vector<256x8xf32> to vector<1x256x8xf32>
    tpu.vector_store %arg10[%c0_44, %c0_45, %c0_46], %41 {strides = array<i32>} : memref<2x256x8xf32, #tpu.memory_space<vmem>>, vector<1x256x8xf32>,
    %c1_47 = arith.constant 1 : index
    %c0_48 = arith.constant 0 : index
    %c0_49 = arith.constant 0 : index
    %42 = vector.load %arg10[%c1_47, %c0_48, %c0_49] : memref<2x256x8xf32, #tpu.memory_space<vmem>>, vector<1x256x8xf32>
    %43 = vector.shape_cast %42 : vector<1x256x8xf32> to vector<256x8xf32>
    %c1_50 = arith.constant 1 : index
    %c0_51 = arith.constant 0 : index
    %c0_52 = arith.constant 0 : index
    %44 = vector.load %arg9[%c1_50, %c0_51, %c0_52] : memref<18x16x12xbf16, #tpu.memory_space<vmem>>, vector<16x16x12xbf16>
    %45 = vector.shape_cast %44 : vector<16x16x12xbf16> to vector<256x12xbf16>
    %c0_53 = arith.constant 0 : index
    %c1_54 = arith.constant 1 : index
    %c0_55 = arith.constant 0 : index
    %c0_56 = arith.constant 0 : index
    %c0_57 = arith.constant 0 : index
    %46 = vector.load %arg6[%c0_53, %c1_54, %c0_55, %c0_56, %c0_57] : memref<1x2x2x12x8xbf16, #tpu.memory_space<vmem>>, vector<1x1x1x12x8xbf16>
    %47 = vector.shape_cast %46 : vector<1x1x1x12x8xbf16> to vector<12x8xbf16>
    %cst_58 = arith.constant dense<0.000000e+00> : vector<256x8xf32>
    %48 = tpu.matmul %45, %47, %cst_58 {dimension_numbers = #tpu.dot_dimension_numbers<[1], [0], [0], [1], [0, 0, 1, 1], [], []>} : vector<256x12xbf16>, vector<12x8xbf16>, vector<256x8xf32> -> vector<256x8xf32>
    %49 = arith.addf %43, %48 : vector<256x8xf32>
    %c2 = arith.constant 2 : index
    %c0_59 = arith.constant 0 : index
    %c0_60 = arith.constant 0 : index
    %50 = vector.load %arg9[%c2, %c0_59, %c0_60] : memref<18x16x12xbf16, #tpu.memory_space<vmem>>, vector<16x16x12xbf16>
    %51 = vector.shape_cast %50 : vector<16x16x12xbf16> to vector<256x12xbf16>
    %c0_61 = arith.constant 0 : index
    %c1_62 = arith.constant 1 : index
    %c1_63 = arith.constant 1 : index
    %c0_64 = arith.constant 0 : index
    %c0_65 = arith.constant 0 : index
    %52 = vector.load %arg6[%c0_61, %c1_62, %c1_63, %c0_64, %c0_65] : memref<1x2x2x12x8xbf16, #tpu.memory_space<vmem>>, vector<1x1x1x12x8xbf16>
    %53 = vector.shape_cast %52 : vector<1x1x1x12x8xbf16> to vector<12x8xbf16>
    %cst_66 = arith.constant dense<0.000000e+00> : vector<256x8xf32>
    %54 = tpu.matmul %51, %53, %cst_66 {dimension_numbers = #tpu.dot_dimension_numbers<[1], [0], [0], [1], [0, 0, 1, 1], [], []>} : vector<256x12xbf16>, vector<12x8xbf16>, vector<256x8xf32> -> vector<256x8xf32>
    %55 = arith.addf %49, %54 : vector<256x8xf32>
    %c1_67 = arith.constant 1 : index
    %c0_68 = arith.constant 0 : index
    %c0_69 = arith.constant 0 : index
    %56 = vector.load %arg10[%c1_67, %c0_68, %c0_69] : memref<2x256x8xf32, #tpu.memory_space<vmem>>, vector<1x256x8xf32>
    %57 = vector.shape_cast %56 : vector<1x256x8xf32> to vector<256x8xf32>
    %58 = vector.shape_cast %55 : vector<256x8xf32> to vector<1x256x8xf32>
    tpu.vector_store %arg10[%c1_67, %c0_68, %c0_69], %58 {strides = array<i32>} : memref<2x256x8xf32, #tpu.memory_space<vmem>>, vector<1x256x8xf32>,
    %c0_i32_70 = arith.constant 0 : i32
    %59 = arith.cmpi eq, %arg2, %c0_i32_70 : i32
    %60 = arith.extui %59 : i1 to i32
    %c0_i32_71 = arith.constant 0 : i32
    %61 = arith.cmpi ne, %60, %c0_i32_71 : i32
    scf.if %61 {
      %c0_72 = arith.constant 0 : index
      %c0_73 = arith.constant 0 : index
      %62 = vector.load %arg7[%c0_72, %c0_73] : memref<1x8xf32, #tpu.memory_space<vmem>>, vector<1x8xf32>
      %63 = vector.shape_cast %62 : vector<1x8xf32> to vector<8xf32>
      %c0_74 = arith.constant 0 : index
      %c0_75 = arith.constant 0 : index
      %c0_76 = arith.constant 0 : index
      %64 = vector.load %arg10[%c0_74, %c0_75, %c0_76] : memref<2x256x8xf32, #tpu.memory_space<vmem>>, vector<1x256x8xf32>
      %65 = vector.shape_cast %64 : vector<1x256x8xf32> to vector<256x8xf32>
      %66 = vector.shape_cast %65 : vector<256x8xf32> to vector<16x16x8xf32>
      %67 = vector.shape_cast %63 : vector<8xf32> to vector<1x1x8xf32>
      %68 = vector.broadcast %67 : vector<1x1x8xf32> to vector<16x16x8xf32>
      %69 = arith.addf %66, %68 : vector<16x16x8xf32>
      %c0_77 = arith.constant 0 : index
      %c0_78 = arith.constant 0 : index
      %c0_79 = arith.constant 0 : index
      %c0_80 = arith.constant 0 : index
      %c0_81 = arith.constant 0 : index
      %70 = vector.load %arg8[%c0_77, %c0_78, %c0_79, %c0_80, %c0_81] : memref<1x16x2x16x8xf32, #tpu.memory_space<vmem>>, vector<1x16x1x16x8xf32>
      %71 = vector.shape_cast %70 : vector<1x16x1x16x8xf32> to vector<16x16x8xf32>
      %72 = vector.shape_cast %69 : vector<16x16x8xf32> to vector<1x16x1x16x8xf32>
      tpu.vector_store %arg8[%c0_77, %c0_78, %c0_79, %c0_80, %c0_81], %72 {strides = array<i32>} : memref<1x16x2x16x8xf32, #tpu.memory_space<vmem>>, vector<1x16x1x16x8xf32>,
      %c1_82 = arith.constant 1 : index
      %c0_83 = arith.constant 0 : index
      %c0_84 = arith.constant 0 : index
      %73 = vector.load %arg10[%c1_82, %c0_83, %c0_84] : memref<2x256x8xf32, #tpu.memory_space<vmem>>, vector<1x256x8xf32>
      %74 = vector.shape_cast %73 : vector<1x256x8xf32> to vector<256x8xf32>
      %75 = vector.shape_cast %74 : vector<256x8xf32> to vector<16x16x8xf32>
      %76 = vector.shape_cast %63 : vector<8xf32> to vector<1x1x8xf32>
      %77 = vector.broadcast %76 : vector<1x1x8xf32> to vector<16x16x8xf32>
      %78 = arith.addf %75, %77 : vector<16x16x8xf32>
      %c0_85 = arith.constant 0 : index
      %c0_86 = arith.constant 0 : index
      %c1_87 = arith.constant 1 : index
      %c0_88 = arith.constant 0 : index
      %c0_89 = arith.constant 0 : index
      %79 = vector.load %arg8[%c0_85, %c0_86, %c1_87, %c0_88, %c0_89] : memref<1x16x2x16x8xf32, #tpu.memory_space<vmem>>, vector<1x16x1x16x8xf32>
      %80 = vector.shape_cast %79 : vector<1x16x1x16x8xf32> to vector<16x16x8xf32>
      %81 = vector.shape_cast %78 : vector<16x16x8xf32> to vector<1x16x1x16x8xf32>
      tpu.vector_store %arg8[%c0_85, %c0_86, %c1_87, %c0_88, %c0_89], %81 {strides = array<i32>} : memref<1x16x2x16x8xf32, #tpu.memory_space<vmem>>, vector<1x16x1x16x8xf32>,
    } else {
    }
    return
  }
  func.func @transform_0(%arg0: i32, %arg1: i32, %arg2: i32) -> (i32, i32, i32, i32) {
    %c0_i32 = arith.constant 0 : i32
    %c0_i32_0 = arith.constant 0 : i32
    return %arg0, %arg1, %c0_i32, %arg2 : i32, i32, i32, i32
  }
  func.func @transform_1(%arg0: i32, %arg1: i32, %arg2: i32) -> (i32, i32, i32, i32) {
    %c16_i32 = arith.constant 16 : i32
    %0 = arith.muli %arg1, %c16_i32 : i32
    %c1_i32 = arith.constant 1 : i32
    %1 = arith.subi %0, %c1_i32 : i32
    %c0_i32 = arith.constant 0 : i32
    %2 = arith.maxsi %1, %c0_i32 : i32
    %c0_i32_0 = arith.constant 0 : i32
    %c0_i32_1 = arith.constant 0 : i32
    return %arg0, %2, %c0_i32_0, %arg2 : i32, i32, i32, i32
  }
  func.func @transform_2(%arg0: i32, %arg1: i32, %arg2: i32) -> (i32, i32, i32, i32) {
    %c16_i32 = arith.constant 16 : i32
    %0 = arith.muli %arg1, %c16_i32 : i32
    %c16_i32_0 = arith.constant 16 : i32
    %1 = arith.addi %0, %c16_i32_0 : i32
    %c15_i32 = arith.constant 15 : i32
    %2 = arith.minsi %1, %c15_i32 : i32
    %c0_i32 = arith.constant 0 : i32
    %c0_i32_1 = arith.constant 0 : i32
    return %arg0, %2, %c0_i32, %arg2 : i32, i32, i32, i32
  }
  func.func @transform_3(%arg0: i32, %arg1: i32, %arg2: i32) -> (i32, i32, i32, i32, i32) {
    %c0_i32 = arith.constant 0 : i32
    %c0_i32_0 = arith.constant 0 : i32
    %c0_i32_1 = arith.constant 0 : i32
    %c0_i32_2 = arith.constant 0 : i32
    %c0_i32_3 = arith.constant 0 : i32
    return %arg2, %c0_i32, %c0_i32_0, %c0_i32_1, %c0_i32_2 : i32, i32, i32, i32, i32
  }
  func.func @transform_4(%arg0: i32, %arg1: i32, %arg2: i32) -> (i32, i32) {
    %c0_i32 = arith.constant 0 : i32
    %c0_i32_0 = arith.constant 0 : i32
    %c0_i32_1 = arith.constant 0 : i32
    return %c0_i32, %c0_i32_0 : i32, i32
  }
  func.func @transform_5(%arg0: i32, %arg1: i32, %arg2: i32) -> (i32, i32, i32, i32, i32) {
    %c0_i32 = arith.constant 0 : i32
    %c0_i32_0 = arith.constant 0 : i32
    %c0_i32_1 = arith.constant 0 : i32
    %c0_i32_2 = arith.constant 0 : i32
    return %arg0, %arg1, %c0_i32, %c0_i32_0, %c0_i32_1 : i32, i32, i32, i32, i32
  }
}

</mosaic_0001>

<bundles_post_ra>
// kernel: tpu_custom_call.1
= control target key start
LH: loop header
LB: loop body
LE: loop exit
PB: predicated region body
PF: predicated region fallthrough
CT: control target
= control target key end

     0   :  { %s3366_s18 = smov 0   ;;  %s3368_s19 = smov 0   ;;  %s4278_s0 = inlined_call_operand.vmem [shape: bf16[2,16,16,4], index: 0, kind: input, shape index: {}]   ;;  %s4279_s1 = inlined_call_operand.vmem [shape: bf16[2,16,16,4], index: 1, kind: input, shape index: {}]   ;;  %s4280_s2 = inlined_call_operand.vmem [shape: bf16[2,16,16,4], index: 2, kind: input, shape index: {}]   ;;  %s4281_s3 = inlined_call_operand.vmem [shape: bf16[1,2,2,12,8], index: 3, kind: input, shape index: {}]   ;;  %s4282_s4 = inlined_call_operand.vmem [shape: f32[1,8], index: 4, kind: input, shape index: {}]   ;;  %s4283_s5 = inlined_call_operand.vmem [shape: f32[2,16,2,16,8], index: 5, kind: output, shape index: {}]  }
   0x1   :  { %s3370_s20 = smov 0  }
   0x2 LB: > { %s34_s1 = sadd.s32 1, %s3326_s19  ;;  %p2783_p0 = scmp.ge.s32.totalorder %s3330_s20, 1  ;;  %s3330_s20 = sphi %s3370_s20, %s15_s20   ;;  %s3326_s19 = sphi %s3368_s19, %s4293_s19   ;;  %s3322_s18 = sphi %s3366_s18, %s4292_s18  }
   0x3   : > { %p36_p1 = scmp.ge.s32.totalorder %s34_s1, 2  ;;  %p305_p2 = scmp.lt.s32.totalorder %s3330_s20, 3 }
   0x5   : > { %s4295_s1 = smov (%p36_p1, %s34_s1), 0  ;;  %p306_p3 = pnand %p2783_p0, %p305_p2 }
   0x6   : > { %p384_p4 = scmp.lt.s32.totalorder (!%p306_p3), %s3322_s18, 1  ;;  %s3332_s24 = smov (!%p306_p3), 4   ;;  %vm1310_vm0 = vcmask (!%p306_p3), 1045504   ;;  %vm1088_vm1 = vcmask (!%p306_p3), 97280   ;;  %vm615_vm2 = vcmask (!%p306_p3), 64544   ;;  %vm760_vm3 = vcmask (!%p306_p3), 31744  }
   0x7   : > { %309 = sbr.rel (%p306_p3) target bundleno = 549 (0x225), region = 40  ;;  %s3333_s25 = smov (!%p306_p3), 8   ;;  %vm761_vm4 = vsmask.f32 (!%p306_p3), 7938  ;;  %vm811_vm6 = vcmask (!%p306_p3), 24576   ;;  %vm942_vm9 = vcmask (!%p306_p3), 97344  }
   0x8   : > { %vm3594_vm5 = vmand (!%p306_p3), %vm760_vm3, %vm761_vm4  ;;  %vm812_vm7 = vsmask.f32 (!%p306_p3), 256  ;;  %vm943_vm10 = vsmask.f32 (!%p306_p3), 7424  ;;  %vm993_vm12 = vcmask (!%p306_p3), 97351   ;;  %vm1141_vm15 = vcmask (!%p306_p3), 64512  }
   0x9   : > { %vm3615_vm8 = vmand (!%p306_p3), %vm811_vm6, %vm812_vm7  ;;  %vm994_vm13 = vsmask.f32 (!%p306_p3), 7966 }
   0xa   : > { %vm3643_vm11 = vmand (!%p306_p3), %vm942_vm9, %vm943_vm10 }
   0xb   : > { %vm3673_vm14 = vmand (!%p306_p3), %vm993_vm12, %vm994_vm13 }
   0xe   : > { %s4297_s18 = smov (!%p384_p4, %s3322_s18), 1 }
   0xf   : > { %s2919_s2 = sshll.u32 %s4297_s18, 7  ;;  %s2923_s9 = sshll.u32 %s4297_s18, 9 }
  0x10   : > { %s3390_s23 = scalar_lea.vmem %s4278_s0, %s2919_s2  ;;  %s4018_s14 = scalar_lea.vmem %s4283_s5, %s2923_s9 }
  0x11   : > { %v3288_v0 = vld [vmem:[%s3390_s23 + $0x10] sm:$0xff]   ;;  %v3289_v1 = vld [vmem:[%s3390_s23] sm:$0xff]   ;;  %v3290_v2 = vld [vmem:[%s3390_s23 + $0x18] sm:$0xff]  }
  0x12   : > { %570 = vrot.lane.b32.xlu1 %v3288_v0, %s3332_s24  ;;  %566 = vrot.lane.b32.xlu0 %v3289_v1, %s3332_s24  ;;  %v3291_v3 = vld [vmem:[%s3390_s23 + $0x8] sm:$0xff]   ;;  %v633_v4 = vshrl.u32 %v3289_v1, 16  ;;  %v636_v8 = vshll.u32 %v3289_v1, 16  ;;  %v3404_v9 = vld [vmem:[%s3390_s23 + $0x20] sm:$0xff]   ;;  %v647_v12 = vshrl.u32 %v3288_v0, 16  ;;  %v654_v17 = vshrl.u32 %v3290_v2, 16 }
  0x13   : > { %v3399_v5 = vld [vmem:[%s3390_s23 + $0x28] sm:$0xff]   ;;  %v640_v6 = vshrl.u32 %v3291_v3, 16  ;;  %v643_v7 = vshll.u32 %v3291_v3, 16  ;;  %v3411_v14 = vld [vmem:[%s3390_s23 + $0x38] sm:$0xff]   ;;  %v3414_v15 = vld [vmem:[%s3390_s23 + $0x30] sm:$0xff]   ;;  %v657_v22 = vshll.u32 %v3290_v2, 16 }
  0x14   : > { %v635_v11 = vrot.slane %v633_v4, 7  ;;  %v862_v18 = vrot.slane %v636_v8, 1  ;;  %v649_v19 = vrot.slane %v647_v12, 7  ;;  %v656_v21 = vrot.slane %v654_v17, 7  ;;  %v3434_v32 = vld [vmem:[%s3390_s23 + $0x48] sm:$0xff]   ;;  %v3438_v34 = vld [vmem:[%s3390_s23 + $0x40] sm:$0xff]  }
  0x15   : > { %v642_v10 = vrot.slane %v640_v6, 7  ;;  %v864_v16 = vrot.slane %v643_v7, 1  ;;  %v650_v23 = vshll.u32 %v3288_v0, 16  ;;  %v668_v24 = vshrl.u32 %v3399_v5, 16  ;;  %v3448_v41 = vld [vmem:[%s3390_s23 + $0x58] sm:$0xff]   ;;  %v3451_v42 = vld [vmem:[%s3390_s23 + $0x50] sm:$0xff]  }
  0x16   : > { %572 = vrot.lane.b32.xlu1 %v3290_v2, %s3332_s24  ;;  %568 = vrot.lane.b32.xlu0 %v3291_v3, %s3332_s24  ;;  %v3418_v20 = vor.u32 %v636_v8, %v635_v11  ;;  %v3425_v28 = vor.u32 %v657_v22, %v656_v21  ;;  %v863_v29 = vor.u32 %v862_v18, %v633_v4  ;;  %v671_v30 = vshll.u32 %v3399_v5, 16  ;;  %v3455_v47 = vld [vmem:[%s3390_s23 + $0x68] sm:$0xff]   ;;  %v3458_v48 = vld [vmem:[%s3390_s23 + $0x60] sm:$0xff]  }
  0x17   : > { %v3406_v13 = vor.u32 %v643_v7, %v642_v10  ;;  %v865_v25 = vor.u32 %v864_v16, %v640_v6  ;;  %v670_v26 = vrot.slane %v668_v24, 7  ;;  %v3423_v27 = vor.u32 %v650_v23, %v649_v19  ;;  %v3304_v8 = vld [vmem:[%s4281_s3] sm:$0x3f]   ;;  %v3514_v21 = vld [vmem:[%s3390_s23 + $0x78] sm:$0xff]  }
  0x18   : > { %v868_v33 = vrot.slane %v657_v22, 1  ;;  %v866_v35 = vrot.slane %v650_v23, 1  ;;  %v664_v36 = vshll.u32 %v3404_v9, 16  ;;  %v661_v37 = vshrl.u32 %v3404_v9, 16  ;;  %v3517_v22 = vld [vmem:[%s3390_s23 + $0x70] sm:$0xff]   ;;  %3256 = vmatprep.subr.msk.bf16.mxu0 %vm1310_vm0, %v3304_v8 }
  0x19   : > { %v3430_v31 = vor.u32 %v671_v30, %v670_v26  ;;  %v682_v39 = vshrl.u32 %v3411_v14, 16  ;;  %v872_v43 = vrot.slane %v671_v30, 1  ;;  %v675_v45 = vshrl.u32 %v3414_v15, 16 }
  0x1a   : > { %576 = vrot.lane.b32.xlu1 %v3399_v5, %s3332_s24  ;;  %574 = vrot.lane.b32.xlu0 %v3404_v9, %s3332_s24  ;;  %v869_v38 = vor.u32 %v868_v33, %v654_v17  ;;  %v867_v40 = vor.u32 %v866_v35, %v647_v12  ;;  %v663_v44 = vrot.slane %v661_v37, 7  ;;  %v870_v46 = vrot.slane %v664_v36, 1 }
  0x1b   : > { %v684_v49 = vrot.slane %v682_v39, 7  ;;  %v685_v50 = vshll.u32 %v3411_v14, 16  ;;  %v696_v51 = vshrl.u32 %v3434_v32, 16  ;;  %v677_v52 = vrot.slane %v675_v45, 7 }
  0x1c   : > { %v689_v53 = vshrl.u32 %v3438_v34, 16  ;;  %v710_v54 = vshrl.u32 %v3448_v41, 16  ;;  %v703_v55 = vshrl.u32 %v3451_v42, 16  ;;  %v678_v56 = vshll.u32 %v3414_v15, 16 }
  0x1d   : > { %v698_v57 = vrot.slane %v696_v51, 7  ;;  %v724_v58 = vshrl.u32 %v3455_v47, 16  ;;  %v717_v59 = vshrl.u32 %v3458_v48, 16  ;;  %v699_v60 = vshll.u32 %v3434_v32, 16 }
  0x1e   : > { %580 = vrot.lane.b32.xlu1 %v3411_v14, %s3332_s24  ;;  %578 = vrot.lane.b32.xlu0 %v3414_v15, %s3332_s24  ;;  %v691_v61 = vrot.slane %v689_v53, 7  ;;  %v712_v62 = vrot.slane %v710_v54, 7  ;;  %v705_v63 = vrot.slane %v703_v55, 7  ;;  %v3487_v2 = vor.u32 %v664_v36, %v663_v44 }
  0x1f   : > { %v726_v0 = vrot.slane %v724_v58, 7  ;;  %v719_v1 = vrot.slane %v717_v59, 7  ;;  %v3489_v3 = vor.u32 %v685_v50, %v684_v49  ;;  %v692_v4 = vshll.u32 %v3438_v34, 16 }
  0x20   : > { %v713_v5 = vshll.u32 %v3448_v41, 16  ;;  %v706_v6 = vshll.u32 %v3451_v42, 16  ;;  %v3494_v7 = vor.u32 %v678_v56, %v677_v52  ;;  %v873_v9 = vor.u32 %v872_v43, %v668_v24 }
  0x21   : > { %v871_v10 = vor.u32 %v870_v46, %v661_v37  ;;  %v727_v11 = vshll.u32 %v3455_v47, 16  ;;  %v720_v12 = vshll.u32 %v3458_v48, 16  ;;  %v3505_v16 = vor.u32 %v699_v60, %v698_v57 }
  0x22   : > { %896 = vrot.lane.b32.xlu1 %v865_v25, %s3333_s25  ;;  %894 = vrot.lane.b32.xlu0 %v863_v29, %s3333_s25  ;;  %v3507_v17 = vor.u32 %v692_v4, %v691_v61  ;;  %v3509_v18 = vor.u32 %v713_v5, %v712_v62  ;;  %v3511_v19 = vor.u32 %v706_v6, %v705_v63  ;;  %v3305_v25 = vld [vmem:[%s4281_s3 + $0x10] sm:$0x3f]   ;;  %v1312_v26 = vsel %vm1310_vm0, %v3304_v8, 0  ;;  %v3306_v63 = vld [vmem:[%s4281_s3 + $0x8] sm:$0x3f]  }
  0x23   : > { %v3519_v23 = vor.u32 %v727_v11, %v726_v0  ;;  %v3521_v24 = vor.u32 %v720_v12, %v719_v1  ;;  %v876_v29 = vrot.slane %v685_v50, 1  ;;  %v738_v30 = vshrl.u32 %v3514_v21, 16  ;;  %2993 = vmatpush3.bf16.msra.mxu0 %v1312_v26  ;;  %3258 = vmatprep.subr.msk.bf16.mxu1 %vm1310_vm0, %v3305_v25 }
  0x24   : > { %v731_v33 = vshrl.u32 %v3517_v22, 16  ;;  %v3334_v35 = vmov 0   ;;  %v1914_v36 = vsel %vm1310_vm0, %v3305_v25, 0  ;;  %v874_v37 = vrot.slane %v678_v56, 1  ;;  %3257 = vmatprep.subr.msk.bf16.mxu0 %vm1310_vm0, %v3306_v63 }
  0x25   : > { %1089 = vst.msk [vmem:[#allocation2] sm:$0xff] %vm1088_vm1, %v3334_v35  ;;  %1136 = vst.msk [vmem:[#allocation2 + $0x88] sm:$0xff] %vm1088_vm1, %v3334_v35  ;;  %3061 = vmatpush3.bf16.msra.mxu1 %v1914_v36  ;;  %v877_v43 = vor.u32 %v876_v29, %v682_v39  ;;  %v741_v44 = vshll.u32 %v3514_v21, 16  ;;  %v734_v46 = vshll.u32 %v3517_v22, 16  ;;  %v880_v57 = vrot.slane %v699_v60, 1 }
  0x26   : > { %584 = vrot.lane.b32.xlu1 %v3434_v32, %s3332_s24  ;;  %582 = vrot.lane.b32.xlu0 %v3438_v34, %s3332_s24  ;;  %v875_v49 = vor.u32 %v874_v37, %v675_v45  ;;  %v878_v14 = vrot.slane %v692_v4, 1  ;;  %v884_v39 = vrot.slane %v713_v5, 1  ;;  %v882_v61 = vrot.slane %v706_v6, 1  ;;  %v3307_v34 = vld [vmem:[%s4281_s3 + $0x18] sm:$0x3f]  }
  0x27   : > { %v881_v15 = vor.u32 %v880_v57, %v696_v51  ;;  %v888_v62 = vrot.slane %v727_v11, 1  ;;  %v886_v51 = vrot.slane %v720_v12, 1  ;;  %v890_v0 = vrot.slane %v734_v46, 1  ;;  %3259 = vmatprep.subr.msk.bf16.mxu1 %vm1310_vm0, %v3307_v34 }
  0x28   : > { %v879_v45 = vor.u32 %v878_v14, %v689_v53  ;;  %v885_v60 = vor.u32 %v884_v39, %v710_v54  ;;  %v883_v32 = vor.u32 %v882_v61, %v703_v55  ;;  %v892_v53 = vrot.slane %v741_v44, 1 }
  0x29   : > { %v3581_v54 = vsel %vm1310_vm0, %v3307_v34, 0  ;;  %v887_v55 = vor.u32 %v886_v51, %v717_v59 }
  0x2a   : > { %900 = vrot.lane.b32.xlu1 %v869_v38, %s3333_s25  ;;  %898 = vrot.lane.b32.xlu0 %v867_v40, %s3333_s25  ;;  %v740_v38 = vrot.slane %v738_v30, 7  ;;  %v733_v40 = vrot.slane %v731_v33, 7 }
  0x2c   : > { %v3546_v50 = vor.u32 %v741_v44, %v740_v38  ;;  %v3548_v52 = vor.u32 %v734_v46, %v733_v40  ;;  %v1238_v56 = vld [vmem:[#allocation2] sm:$0xff] }
  0x2d   : > { %2994 = vmatprep.mubr.msk.bf16.mxu0 %vm1088_vm1, %v1238_v56 }
  0x2e   : > { %588 = vrot.lane.b32.xlu1 %v3448_v41, %s3332_s24  ;;  %586 = vrot.lane.b32.xlu0 %v3451_v42, %s3332_s24  ;;  %v889_v41 = vor.u32 %v888_v62, %v724_v58  ;;  %v3578_v42 = vsel %vm1310_vm0, %v3306_v63, 0  ;;  %v891_v58 = vor.u32 %v890_v0, %v731_v33 }
  0x32   : > { %904 = vrot.lane.b32.xlu1 %v873_v9, %s3333_s25  ;;  %902 = vrot.lane.b32.xlu0 %v871_v10, %s3333_s25 }
  0x36   : > { %592 = vrot.lane.b32.xlu1 %v3455_v47, %s3332_s24  ;;  %590 = vrot.lane.b32.xlu0 %v3458_v48, %s3332_s24  ;;  %v893_v47 = vor.u32 %v892_v53, %v738_v30 }
  0x3a   : > { %908 = vrot.lane.b32.xlu1 %v877_v43, %s3333_s25  ;;  %906 = vrot.lane.b32.xlu0 %v875_v49, %s3333_s25 }
  0x3e   : > { %596 = vrot.lane.b32.xlu1 %v3514_v21, %s3332_s24  ;;  %594 = vrot.lane.b32.xlu0 %v3517_v22, %s3332_s24 }
  0x42   : > { %912 = vrot.lane.b32.xlu1 %v881_v15, %s3333_s25  ;;  %910 = vrot.lane.b32.xlu0 %v879_v45, %s3333_s25 }
  0x46   : > { %916 = vrot.lane.b32.xlu1 %v885_v60, %s3333_s25  ;;  %914 = vrot.lane.b32.xlu0 %v883_v32, %s3333_s25 }
  0x4a   : > { %920 = vrot.lane.b32.xlu1 %v889_v41, %s3333_s25  ;;  %918 = vrot.lane.b32.xlu0 %v887_v55, %s3333_s25 }
  0x4e   : > { %924 = vrot.lane.b32.xlu1 %v893_v47, %s3333_s25  ;;  %922 = vrot.lane.b32.xlu0 %v891_v58, %s3333_s25 }
  0x84   : > { %v571_v1 = vpop.permute.xlu1 %570  ;;  %v567_v4 = vpop.permute.xlu0 %566 }
  0x85   : > { %618 = vst.msk [vmem:[#allocation2 + $0x18] sm:$0xff] %vm615_vm2, %v571_v1  ;;  %616 = vst.msk [vmem:[#allocation2 + $0x8] sm:$0xff] %vm615_vm2, %v567_v4 }
  0x88   : > { %v573_v48 = vpop.permute.xlu1 %572  ;;  %v569_v59 = vpop.permute.xlu0 %568 }
  0x89   : > { %619 = vst.msk [vmem:[#allocation2 + $0x20] sm:$0xff] %vm615_vm2, %v573_v48  ;;  %617 = vst.msk [vmem:[#allocation2 + $0x10] sm:$0xff] %vm615_vm2, %v569_v59 }
  0x8c   : > { %v769_v6 = vld [vmem:[#allocation2 + $0x18] sm:$0xff]  ;;  %v577_v8 = vpop.permute.xlu1 %576  ;;  %v763_v10 = vld [vmem:[#allocation2 + $0x8] sm:$0xff]  ;;  %v575_v11 = vpop.permute.xlu0 %574 }
  0x8d   : > { %v770_v9 = vsel %vm3594_vm5, %v3423_v27, %v769_v6  ;;  %621 = vst.msk [vmem:[#allocation2 + $0x30] sm:$0xff] %vm615_vm2, %v577_v8  ;;  %v764_v12 = vsel %vm3594_vm5, %v3418_v20, %v763_v10  ;;  %620 = vst.msk [vmem:[#allocation2 + $0x28] sm:$0xff] %vm615_vm2, %v575_v11 }
  0x8e   : > { %771 = vst [vmem:[#allocation2 + $0x18] sm:$0xff] %v770_v9  ;;  %765 = vst [vmem:[#allocation2 + $0x8] sm:$0xff] %v764_v12 }
  0x90   : > { %v772_v21 = vld [vmem:[#allocation2 + $0x20] sm:$0xff]  ;;  %v581_v22 = vpop.permute.xlu1 %580  ;;  %v766_v25 = vld [vmem:[#allocation2 + $0x10] sm:$0xff]  ;;  %v579_v26 = vpop.permute.xlu0 %578 }
  0x91   : > { %v773_v27 = vsel %vm3594_vm5, %v3425_v28, %v772_v21  ;;  %623 = vst.msk [vmem:[#allocation2 + $0x40] sm:$0xff] %vm615_vm2, %v581_v22  ;;  %v767_v20 = vsel %vm3594_vm5, %v3406_v13, %v766_v25  ;;  %622 = vst.msk [vmem:[#allocation2 + $0x38] sm:$0xff] %vm615_vm2, %v579_v26 }
  0x92   : > { %774 = vst [vmem:[#allocation2 + $0x20] sm:$0xff] %v773_v27  ;;  %768 = vst [vmem:[#allocation2 + $0x10] sm:$0xff] %v767_v20 }
  0x94   : > { %v778_v30 = vld [vmem:[#allocation2 + $0x30] sm:$0xff]  ;;  %v3619_v33 = vpop.permute.xlu1 %896  ;;  %v775_v36 = vld [vmem:[#allocation2 + $0x28] sm:$0xff]  ;;  %v895_v37 = vpop.permute.xlu0 %894 }
  0x95   : > { %v820_v28 = vld [vmem:[#allocation2 + $0x18] sm:$0x1]  ;;  %v779_v35 = vsel %vm3594_vm5, %v3430_v31, %v778_v30  ;;  %v814_v38 = vld [vmem:[#allocation2 + $0x8] sm:$0x1]  ;;  %v776_v40 = vsel %vm3594_vm5, %v3487_v2, %v775_v36 }
  0x96   : > { %v821_v13 = vsel %vm3615_vm8, 0, %v820_v28  ;;  %780 = vst [vmem:[#allocation2 + $0x30] sm:$0xff] %v779_v35  ;;  %v815_v43 = vsel %vm3615_vm8, 0, %v814_v38  ;;  %777 = vst [vmem:[#allocation2 + $0x28] sm:$0xff] %v776_v40 }
  0x97   : > { %822 = vst [vmem:[#allocation2 + $0x18] sm:$0x1] %v821_v13  ;;  %816 = vst [vmem:[#allocation2 + $0x8] sm:$0x1] %v815_v43 }
  0x98   : > { %v784_v44 = vld [vmem:[#allocation2 + $0x40] sm:$0xff]  ;;  %v585_v46 = vpop.permute.xlu1 %584  ;;  %v781_v56 = vld [vmem:[#allocation2 + $0x38] sm:$0xff]  ;;  %v583_v57 = vpop.permute.xlu0 %582 }
  0x99   : > { %v823_v31 = vld [vmem:[#allocation2 + $0x20] sm:$0x1]  ;;  %v785_v49 = vsel %vm3594_vm5, %v3489_v3, %v784_v44  ;;  %625 = vst.msk [vmem:[#allocation2 + $0x50] sm:$0xff] %vm615_vm2, %v585_v46  ;;  %v817_v14 = vld [vmem:[#allocation2 + $0x10] sm:$0x1]  ;;  %v782_v15 = vsel %vm3594_vm5, %v3494_v7, %v781_v56  ;;  %624 = vst.msk [vmem:[#allocation2 + $0x48] sm:$0xff] %vm615_vm2, %v583_v57 }
  0x9a   : > { %v824_v2 = vsel %vm3615_vm8, 0, %v823_v31  ;;  %786 = vst [vmem:[#allocation2 + $0x40] sm:$0xff] %v785_v49  ;;  %v818_v3 = vsel %vm3615_vm8, 0, %v817_v14  ;;  %783 = vst [vmem:[#allocation2 + $0x38] sm:$0xff] %v782_v15 }
  0x9b   : > { %825 = vst [vmem:[#allocation2 + $0x20] sm:$0x1] %v824_v2  ;;  %819 = vst [vmem:[#allocation2 + $0x10] sm:$0x1] %v818_v3 }
  0x9c   : > { %v901_v45 = vpop.permute.xlu1 %900  ;;  %v899_v60 = vpop.permute.xlu0 %898 }
  0x9d   : > { %v829_v61 = vld [vmem:[#allocation2 + $0x30] sm:$0x1]  ;;  %v826_v32 = vld [vmem:[#allocation2 + $0x28] sm:$0x1] }
  0x9e   : > { %v830_v62 = vsel %vm3615_vm8, 0, %v829_v61  ;;  %v951_v7 = vld [vmem:[#allocation2 + $0x18] sm:$0xff]  ;;  %v827_v51 = vsel %vm3615_vm8, 0, %v826_v32  ;;  %v945_v63 = vld [vmem:[#allocation2 + $0x8] sm:$0xff]  ;;  %v3335_v61 = vmov 0.0  }
  0x9f   : > { %831 = vst [vmem:[#allocation2 + $0x30] sm:$0x1] %v830_v62  ;;  %v952_v34 = vsel %vm3643_vm11, %v899_v60, %v951_v7  ;;  %828 = vst [vmem:[#allocation2 + $0x28] sm:$0x1] %v827_v51  ;;  %v946_v41 = vsel %vm3643_vm11, %v895_v37, %v945_v63 }
  0xa0   : > { %v790_v53 = vld [vmem:[#allocation2 + $0x50] sm:$0xff]  ;;  %953 = vst [vmem:[#allocation2 + $0x18] sm:$0xff] %v952_v34  ;;  %v589_v55 = vpop.permute.xlu1 %588  ;;  %947 = vst [vmem:[#allocation2 + $0x8] sm:$0xff] %v946_v41  ;;  %v787_v58 = vld [vmem:[#allocation2 + $0x48] sm:$0xff]  ;;  %v587_v1 = vpop.permute.xlu0 %586 }
  0xa1   : > { %v835_v0 = vld [vmem:[#allocation2 + $0x40] sm:$0x1]  ;;  %v791_v47 = vsel %vm3594_vm5, %v3505_v16, %v790_v53  ;;  %627 = vst.msk [vmem:[#allocation2 + $0x60] sm:$0xff] %vm615_vm2, %v589_v55  ;;  %v832_v48 = vld [vmem:[#allocation2 + $0x38] sm:$0x1]  ;;  %v788_v59 = vsel %vm3594_vm5, %v3507_v17, %v787_v58  ;;  %626 = vst.msk [vmem:[#allocation2 + $0x58] sm:$0xff] %vm615_vm2, %v587_v1 }
  0xa2   : > { %v836_v4 = vsel %vm3615_vm8, 0, %v835_v0  ;;  %792 = vst [vmem:[#allocation2 + $0x50] sm:$0xff] %v791_v47  ;;  %v954_v6 = vld [vmem:[#allocation2 + $0x20] sm:$0xff]  ;;  %v833_v16 = vsel %vm3615_vm8, 0, %v832_v48  ;;  %v948_v8 = vld [vmem:[#allocation2 + $0x10] sm:$0xff]  ;;  %789 = vst [vmem:[#allocation2 + $0x48] sm:$0xff] %v788_v59 }
  0xa3   : > { %837 = vst [vmem:[#allocation2 + $0x40] sm:$0x1] %v836_v4  ;;  %v955_v9 = vsel %vm3643_vm11, %v901_v45, %v954_v6  ;;  %834 = vst [vmem:[#allocation2 + $0x38] sm:$0x1] %v833_v16  ;;  %v949_v10 = vsel %vm3643_vm11, %v3619_v33, %v948_v8 }
  0xa4   : > { %956 = vst [vmem:[#allocation2 + $0x20] sm:$0xff] %v955_v9  ;;  %v905_v11 = vpop.permute.xlu1 %904  ;;  %950 = vst [vmem:[#allocation2 + $0x10] sm:$0xff] %v949_v10  ;;  %v903_v12 = vpop.permute.xlu0 %902 }
  0xa5   : > { %1144 = vst.msk [vmem:[#allocation3 + $0x10] sm:$0xff] %vm1141_vm15, %v3335_v61  ;;  %1142 = vst.msk [vmem:[#allocation3] sm:$0xff] %vm1141_vm15, %v3335_v61 }
  0xa6   : > { %v960_v21 = vld [vmem:[#allocation2 + $0x30] sm:$0xff]  ;;  %v957_v25 = vld [vmem:[#allocation2 + $0x28] sm:$0xff]  ;;  %1143 = vst.msk [vmem:[#allocation3 + $0x8] sm:$0xff] %vm1141_vm15, %v3335_v61  ;;  %1145 = vst.msk [vmem:[#allocation3 + $0x18] sm:$0xff] %vm1141_vm15, %v3335_v61 }
  0xa7   : > { %v1002_v22 = vld [vmem:[#allocation2 + $0x18] sm:$0x80]  ;;  %v961_v27 = vsel %vm3643_vm11, %v905_v11, %v960_v21  ;;  %v996_v26 = vld [vmem:[#allocation2 + $0x8] sm:$0x80]  ;;  %v958_v33 = vsel %vm3643_vm11, %v903_v12, %v957_v25  ;;  %1146 = vst.msk [vmem:[#allocation3 + $0x20] sm:$0xff] %vm1141_vm15, %v3335_v61  ;;  %1147 = vst.msk [vmem:[#allocation3 + $0x28] sm:$0xff] %vm1141_vm15, %v3335_v61 }
  0xa8   : > { %v1003_v20 = vsel %vm3673_vm14, 0, %v1002_v22  ;;  %v796_v30 = vld [vmem:[#allocation2 + $0x60] sm:$0xff]  ;;  %962 = vst [vmem:[#allocation2 + $0x30] sm:$0xff] %v961_v27  ;;  %v593_v28 = vpop.permute.xlu1 %592  ;;  %v997_v35 = vsel %vm3673_vm14, 0, %v996_v26  ;;  %v793_v13 = vld [vmem:[#allocation2 + $0x58] sm:$0xff]  ;;  %959 = vst [vmem:[#allocation2 + $0x28] sm:$0xff] %v958_v33  ;;  %v591_v38 = vpop.permute.xlu0 %590 }
  0xa9   : > { %v841_v36 = vld [vmem:[#allocation2 + $0x50] sm:$0x1]  ;;  %1004 = vst [vmem:[#allocation2 + $0x18] sm:$0x80] %v1003_v20  ;;  %v797_v37 = vsel %vm3594_vm5, %v3509_v18, %v796_v30  ;;  %629 = vst.msk [vmem:[#allocation2 + $0x70] sm:$0xff] %vm615_vm2, %v593_v28  ;;  %v794_v44 = vsel %vm3594_vm5, %v3511_v19, %v793_v13 }
  0xaa   : > { %998 = vst [vmem:[#allocation2 + $0x8] sm:$0x80] %v997_v35  ;;  %v842_v40 = vsel %vm3615_vm8, 0, %v841_v36  ;;  %v838_v43 = vld [vmem:[#allocation2 + $0x48] sm:$0x1]  ;;  %798 = vst [vmem:[#allocation2 + $0x60] sm:$0xff] %v797_v37 }
  0xab   : > { %628 = vst.msk [vmem:[#allocation2 + $0x68] sm:$0xff] %vm615_vm2, %v591_v38  ;;  %v966_v46 = vld [vmem:[#allocation2 + $0x40] sm:$0xff]  ;;  %843 = vst [vmem:[#allocation2 + $0x50] sm:$0x1] %v842_v40  ;;  %v839_v18 = vsel %vm3615_vm8, 0, %v838_v43  ;;  %v963_v49 = vld [vmem:[#allocation2 + $0x38] sm:$0xff] }
  0xac   : > { %v1005_v31 = vld [vmem:[#allocation2 + $0x20] sm:$0x80]  ;;  %795 = vst [vmem:[#allocation2 + $0x58] sm:$0xff] %v794_v44  ;;  %v999_v56 = vld [vmem:[#allocation2 + $0x10] sm:$0x80]  ;;  %v909_v2 = vpop.permute.xlu1 %908  ;;  %v907_v15 = vpop.permute.xlu0 %906  ;;  %1148 = vst.msk [vmem:[#allocation3 + $0x30] sm:$0xff] %vm1141_vm15, %v3335_v61 }
  0xad   : > { %840 = vst [vmem:[#allocation2 + $0x48] sm:$0x1] %v839_v18  ;;  %v1006_v57 = vsel %vm3673_vm14, 0, %v1005_v31  ;;  %v1000_v14 = vsel %vm3673_vm14, 0, %v999_v56  ;;  %v967_v19 = vsel %vm3643_vm11, %v909_v2, %v966_v46  ;;  %v964_v3 = vsel %vm3643_vm11, %v907_v15, %v963_v49  ;;  %1149 = vst.msk [vmem:[#allocation3 + $0x38] sm:$0xff] %vm1141_vm15, %v3335_v61 }
  0xae   : > { %1007 = vst [vmem:[#allocation2 + $0x20] sm:$0x80] %v1006_v57  ;;  %1001 = vst [vmem:[#allocation2 + $0x10] sm:$0x80] %v1000_v14 }
  0xaf   : > { %968 = vst [vmem:[#allocation2 + $0x40] sm:$0xff] %v967_v19  ;;  %v3705_v45 = vld [vmem:[#allocation2 + $0x30] sm:$0x80]  ;;  %965 = vst [vmem:[#allocation2 + $0x38] sm:$0xff] %v964_v3  ;;  %v1008_v62 = vld [vmem:[#allocation2 + $0x28] sm:$0x80] }
  0xb0   : > { %1150 = vst.msk [vmem:[#allocation3 + $0x40] sm:$0xff] %vm1141_vm15, %v3335_v61  ;;  %1151 = vst.msk [vmem:[#allocation3 + $0x48] sm:$0xff] %vm1141_vm15, %v3335_v61  ;;  %v1012_v60 = vsel %vm3673_vm14, 0, %v3705_v45  ;;  %v802_v32 = vld [vmem:[#allocation2 + $0x70] sm:$0xff]  ;;  %v597_v7 = vpop.permute.xlu1 %596  ;;  %v1009_v63 = vsel %vm3673_vm14, 0, %v1008_v62  ;;  %v595_v53 = vpop.permute.xlu0 %594 }
  0xb1   : > { %1152 = vst.msk [vmem:[#allocation3 + $0x50] sm:$0xff] %vm1141_vm15, %v3335_v61  ;;  %1153 = vst.msk [vmem:[#allocation3 + $0x58] sm:$0xff] %vm1141_vm15, %v3335_v61  ;;  %v847_v51 = vld [vmem:[#allocation2 + $0x60] sm:$0x1]  ;;  %v803_v34 = vsel %vm3594_vm5, %v3519_v23, %v802_v32  ;;  %v3844_v55 = vld [vmem:[#allocation2 + $0x8] sm:$0xff] }
  0xb2   : > { %1154 = vst.msk [vmem:[#allocation3 + $0x60] sm:$0xff] %vm1141_vm15, %v3335_v61  ;;  %1155 = vst.msk [vmem:[#allocation3 + $0x68] sm:$0xff] %vm1141_vm15, %v3335_v61  ;;  %v799_v41 = vld [vmem:[#allocation2 + $0x68] sm:$0xff]  ;;  %v848_v0 = vsel %vm3615_vm8, 0, %v847_v51  ;;  %2995 = vmatmul.mubr.msk.bf16.vlgmr.msra.gmra.mrb[0].mxu0 %vm1088_vm1, %v3844_v55  ;;  %3062 = vmatprep.mubr.msk.bf16.mxu1 %vm1088_vm1, %v3844_v55  ;;  %v972_v23 = vld [vmem:[#allocation2 + $0x50] sm:$0xff] }
  0xb3   : > { %1156 = vst.msk [vmem:[#allocation3 + $0x70] sm:$0xff] %vm1141_vm15, %v3335_v61  ;;  %1157 = vst.msk [vmem:[#allocation3 + $0x78] sm:$0xff] %vm1141_vm15, %v3335_v61  ;;  %v844_v47 = vld [vmem:[#allocation2 + $0x58] sm:$0x1]  ;;  %v800_v58 = vsel %vm3594_vm5, %v3521_v24, %v799_v41  ;;  %3027 = vmatpush3.bf16.msra.mxu0 %v3578_v42 }
  0xb4   : > { %1158 = vst.msk [vmem:[#allocation3 + $0x80] sm:$0xff] %vm1141_vm15, %v3335_v61  ;;  %1159 = vst.msk [vmem:[#allocation3 + $0x88] sm:$0xff] %vm1141_vm15, %v3335_v61  ;;  %v845_v1 = vsel %vm3615_vm8, 0, %v844_v47  ;;  %v969_v4 = vld [vmem:[#allocation2 + $0x48] sm:$0xff]  ;;  %v913_v48 = vpop.permute.xlu1 %912  ;;  %v911_v6 = vpop.permute.xlu0 %910  ;;  %v3871_v42 = vld [vmem:[#allocation2 + $0x18] sm:$0xff] }
  0xb5   : > { %1160 = vst.msk [vmem:[#allocation3 + $0x90] sm:$0xff] %vm1141_vm15, %v3335_v61  ;;  %1161 = vst.msk [vmem:[#allocation3 + $0x98] sm:$0xff] %vm1141_vm15, %v3335_v61  ;;  %v973_v59 = vsel %vm3643_vm11, %v913_v48, %v972_v23  ;;  %v3861_v16 = vld [vmem:[#allocation2 + $0x10] sm:$0xff]  ;;  %v970_v10 = vsel %vm3643_vm11, %v911_v6, %v969_v4  ;;  %v3888_v28 = vld [vmem:[#allocation2 + $0x20] sm:$0xff] }
  0xb6   : > { %1162 = vst.msk [vmem:[#allocation3 + $0xa0] sm:$0xff] %vm1141_vm15, %v3335_v61  ;;  %1163 = vst.msk [vmem:[#allocation3 + $0xa8] sm:$0xff] %vm1141_vm15, %v3335_v61  ;;  %v1017_v24 = vld [vmem:[#allocation2 + $0x40] sm:$0x80]  ;;  %v1014_v9 = vld [vmem:[#allocation2 + $0x38] sm:$0x80]  ;;  %2998 = vmatprep.mubr.msk.bf16.mxu0 %vm1088_vm1, %v3861_v16  ;;  %3063 = vmatmul.mubr.msk.bf16.vlgmr.msra.gmra.mrb[0].mxu1 %vm1088_vm1, %v3861_v16 }
  0xb7   : > { %1164 = vst.msk [vmem:[#allocation3 + $0xb0] sm:$0xff] %vm1141_vm15, %v3335_v61  ;;  %1165 = vst.msk [vmem:[#allocation3 + $0xb8] sm:$0xff] %vm1141_vm15, %v3335_v61  ;;  %v1018_v8 = vsel %vm3673_vm14, 0, %v1017_v24  ;;  %v1015_v11 = vsel %vm3673_vm14, 0, %v1014_v9  ;;  %3095 = vmatpush3.bf16.msra.mxu1 %v3581_v54  ;;  %3066 = vmatprep.mubr.msk.bf16.mxu1 %vm1088_vm1, %v3871_v42 }
  0xb8   : > { %1166 = vst.msk [vmem:[#allocation3 + $0xc0] sm:$0xff] %vm1141_vm15, %v3335_v61  ;;  %1167 = vst.msk [vmem:[#allocation3 + $0xc8] sm:$0xff] %vm1141_vm15, %v3335_v61  ;;  %v917_v21 = vpop.permute.xlu1 %916  ;;  %v915_v26 = vpop.permute.xlu0 %914 }
  0xb9   : > { %1168 = vst.msk [vmem:[#allocation3 + $0xd0] sm:$0xff] %vm1141_vm15, %v3335_v61  ;;  %1169 = vst.msk [vmem:[#allocation3 + $0xd8] sm:$0xff] %vm1141_vm15, %v3335_v61 }
  0xba   : > { %1170 = vst.msk [vmem:[#allocation3 + $0xe0] sm:$0xff] %vm1141_vm15, %v3335_v61  ;;  %1171 = vst.msk [vmem:[#allocation3 + $0xe8] sm:$0xff] %vm1141_vm15, %v3335_v61  ;;  %2999 = vmatmul.mubr.msk.bf16.gmra.mrb[4].mxu0 %vm1088_vm1, %v3871_v42 }
  0xbb   : > { %1172 = vst.msk [vmem:[#allocation3 + $0xf0] sm:$0xff] %vm1141_vm15, %v3335_v61  ;;  %1173 = vst.msk [vmem:[#allocation3 + $0xf8] sm:$0xff] %vm1141_vm15, %v3335_v61  ;;  %3002 = vmatprep.mubr.msk.bf16.mxu0 %vm1088_vm1, %v3888_v28 }
  0xbc   : > { %1174 = vst.msk [vmem:[#allocation3 + $0x100] sm:$0xff] %vm1141_vm15, %v3335_v61  ;;  %1175 = vst.msk [vmem:[#allocation3 + $0x108] sm:$0xff] %vm1141_vm15, %v3335_v61  ;;  %v921_v43 = vpop.permute.xlu1 %920  ;;  %v919_v46 = vpop.permute.xlu0 %918 }
  0xbd   : > { %1176 = vst.msk [vmem:[#allocation3 + $0x110] sm:$0xff] %vm1141_vm15, %v3335_v61  ;;  %1177 = vst.msk [vmem:[#allocation3 + $0x118] sm:$0xff] %vm1141_vm15, %v3335_v61 }
  0xbe   : > { %1178 = vst.msk [vmem:[#allocation3 + $0x120] sm:$0xff] %vm1141_vm15, %v3335_v61  ;;  %1179 = vst.msk [vmem:[#allocation3 + $0x128] sm:$0xff] %vm1141_vm15, %v3335_v61  ;;  %3067 = vmatmul.mubr.msk.bf16.gmra.mrb[4].mxu1 %vm1088_vm1, %v3888_v28 }
  0xbf   : > { %1180 = vst.msk [vmem:[#allocation3 + $0x130] sm:$0xff] %vm1141_vm15, %v3335_v61  ;;  %1181 = vst.msk [vmem:[#allocation3 + $0x138] sm:$0xff] %vm1141_vm15, %v3335_v61 }
  0xc0   : > { %1182 = vst.msk [vmem:[#allocation3 + $0x140] sm:$0xff] %vm1141_vm15, %v3335_v61  ;;  %1183 = vst.msk [vmem:[#allocation3 + $0x148] sm:$0xff] %vm1141_vm15, %v3335_v61  ;;  %v923_v62 = vpop.permute.xlu0 %922 }
  0xc1   : > { %1184 = vst.msk [vmem:[#allocation3 + $0x150] sm:$0xff] %vm1141_vm15, %v3335_v61  ;;  %1185 = vst.msk [vmem:[#allocation3 + $0x158] sm:$0xff] %vm1141_vm15, %v3335_v61 }
  0xc2   : > { %1186 = vst.msk [vmem:[#allocation3 + $0x160] sm:$0xff] %vm1141_vm15, %v3335_v61  ;;  %1187 = vst.msk [vmem:[#allocation3 + $0x168] sm:$0xff] %vm1141_vm15, %v3335_v61 }
  0xc3   : > { %1188 = vst.msk [vmem:[#allocation3 + $0x170] sm:$0xff] %vm1141_vm15, %v3335_v61  ;;  %1189 = vst.msk [vmem:[#allocation3 + $0x178] sm:$0xff] %vm1141_vm15, %v3335_v61 }
  0xc4   : > { %1190 = vst.msk [vmem:[#allocation3 + $0x180] sm:$0xff] %vm1141_vm15, %v3335_v61  ;;  %1191 = vst.msk [vmem:[#allocation3 + $0x188] sm:$0xff] %vm1141_vm15, %v3335_v61 }
  0xc5   : > { %1192 = vst.msk [vmem:[#allocation3 + $0x190] sm:$0xff] %vm1141_vm15, %v3335_v61  ;;  %1193 = vst.msk [vmem:[#allocation3 + $0x198] sm:$0xff] %vm1141_vm15, %v3335_v61 }
  0xc6   : > { %1194 = vst.msk [vmem:[#allocation3 + $0x1a0] sm:$0xff] %vm1141_vm15, %v3335_v61  ;;  %1195 = vst.msk [vmem:[#allocation3 + $0x1a8] sm:$0xff] %vm1141_vm15, %v3335_v61 }
  0xc7   : > { %1196 = vst.msk [vmem:[#allocation3 + $0x1b0] sm:$0xff] %vm1141_vm15, %v3335_v61  ;;  %1197 = vst.msk [vmem:[#allocation3 + $0x1b8] sm:$0xff] %vm1141_vm15, %v3335_v61 }
  0xc8   : > { %1198 = vst.msk [vmem:[#allocation3 + $0x1c0] sm:$0xff] %vm1141_vm15, %v3335_v61  ;;  %1199 = vst.msk [vmem:[#allocation3 + $0x1c8] sm:$0xff] %vm1141_vm15, %v3335_v61 }
  0xc9   : > { %1200 = vst.msk [vmem:[#allocation3 + $0x1d0] sm:$0xff] %vm1141_vm15, %v3335_v61  ;;  %1201 = vst.msk [vmem:[#allocation3 + $0x1d8] sm:$0xff] %vm1141_vm15, %v3335_v61 }
  0xca   : > { %1202 = vst.msk [vmem:[#allocation3 + $0x1e0] sm:$0xff] %vm1141_vm15, %v3335_v61  ;;  %1203 = vst.msk [vmem:[#allocation3 + $0x1e8] sm:$0xff] %vm1141_vm15, %v3335_v61 }
  0xcb   : > { %1204 = vst.msk [vmem:[#allocation3 + $0x1f0] sm:$0xff] %vm1141_vm15, %v3335_v61  ;;  %1205 = vst.msk [vmem:[#allocation3 + $0x1f8] sm:$0xff] %vm1141_vm15, %v3335_v61 }
  0xcc   : > { %1013 = vst [vmem:[#allocation2 + $0x30] sm:$0x80] %v1012_v60  ;;  %631 = vst.msk [vmem:[#allocation2 + $0x80] sm:$0xff] %vm615_vm2, %v597_v7  ;;  %v925_v60 = vpop.permute.xlu1 %924 }
  0xcd   : > { %1010 = vst [vmem:[#allocation2 + $0x28] sm:$0x80] %v1009_v63  ;;  %804 = vst [vmem:[#allocation2 + $0x70] sm:$0xff] %v803_v34 }
  0xce   : > { %630 = vst.msk [vmem:[#allocation2 + $0x78] sm:$0xff] %vm615_vm2, %v595_v53  ;;  %849 = vst [vmem:[#allocation2 + $0x60] sm:$0x1] %v848_v0 }
  0xcf   : > { %801 = vst [vmem:[#allocation2 + $0x68] sm:$0xff] %v800_v58  ;;  %846 = vst [vmem:[#allocation2 + $0x58] sm:$0x1] %v845_v1 }
  0xd0   : > { %974 = vst [vmem:[#allocation2 + $0x50] sm:$0xff] %v973_v59  ;;  %1019 = vst [vmem:[#allocation2 + $0x40] sm:$0x80] %v1018_v8 }
  0xd1   : > { %971 = vst [vmem:[#allocation2 + $0x48] sm:$0xff] %v970_v10  ;;  %1016 = vst [vmem:[#allocation2 + $0x38] sm:$0x80] %v1015_v11  ;;  %v1206_v10 = vld [vmem:[#allocation3] sm:$0xff]  ;;  %v1209_v11 = vld [vmem:[#allocation3 + $0x18] sm:$0xff] }
  0xd3   : > { %v808_v12 = vld [vmem:[#allocation2 + $0x80] sm:$0xff]  ;;  %v3912_v56 = vld [vmem:[#allocation2 + $0x30] sm:$0xff] }
  0xd4   : > { %v853_v22 = vld [vmem:[#allocation2 + $0x70] sm:$0x1]  ;;  %v809_v27 = vsel %vm3594_vm5, %v3546_v50, %v808_v12  ;;  %v3902_v38 = vld [vmem:[#allocation2 + $0x28] sm:$0xff] }
  0xd5   : > { %v805_v25 = vld [vmem:[#allocation2 + $0x78] sm:$0xff]  ;;  %v854_v20 = vsel %vm3615_vm8, 0, %v853_v22  ;;  %810 = vst [vmem:[#allocation2 + $0x80] sm:$0xff] %v809_v27  ;;  %v978_v33 = vld [vmem:[#allocation2 + $0x60] sm:$0xff]  ;;  %3070 = vmatprep.mubr.msk.bf16.mxu1 %vm1088_vm1, %v3902_v38  ;;  %3003 = vmatmul.mubr.msk.bf16.gmra.mrb[8].mxu0 %vm1088_vm1, %v3902_v38 }
  0xd6   : > { %v850_v30 = vld [vmem:[#allocation2 + $0x68] sm:$0x1]  ;;  %v806_v54 = vsel %vm3594_vm5, %v3548_v52, %v805_v25  ;;  %855 = vst [vmem:[#allocation2 + $0x70] sm:$0x1] %v854_v20  ;;  %v979_v35 = vsel %vm3643_vm11, %v917_v21, %v978_v33  ;;  %v975_v36 = vld [vmem:[#allocation2 + $0x58] sm:$0xff]  ;;  %3006 = vmatprep.mubr.msk.bf16.mxu0 %vm1088_vm1, %v3912_v56  ;;  %3071 = vmatmul.mubr.msk.bf16.gmra.mrb[8].mxu1 %vm1088_vm1, %v3912_v56 }
  0xd7   : > { %v851_v50 = vsel %vm3615_vm8, 0, %v850_v30  ;;  %807 = vst [vmem:[#allocation2 + $0x78] sm:$0xff] %v806_v54  ;;  %980 = vst [vmem:[#allocation2 + $0x60] sm:$0xff] %v979_v35  ;;  %v976_v52 = vsel %vm3643_vm11, %v915_v26, %v975_v36  ;;  %v1023_v5 = vld [vmem:[#allocation2 + $0x50] sm:$0x80]  ;;  %v1246_v7 = vld [vmem:[#allocation2 + $0x40] sm:$0xff] }
  0xd8   : > { %852 = vst [vmem:[#allocation2 + $0x68] sm:$0x1] %v851_v50  ;;  %977 = vst [vmem:[#allocation2 + $0x58] sm:$0xff] %v976_v52  ;;  %v1024_v37 = vsel %vm3673_vm14, 0, %v1023_v5  ;;  %v1020_v13 = vld [vmem:[#allocation2 + $0x48] sm:$0x80] }
  0xd9   : > { %1025 = vst [vmem:[#allocation2 + $0x50] sm:$0x80] %v1024_v37  ;;  %v1021_v40 = vsel %vm3673_vm14, 0, %v1020_v13  ;;  %v1847_v61 = vld [vmem:[#allocation2 + $0x38] sm:$0xff]  ;;  %v1811_v26 = vld [vmem:[#allocation3 + $0x110] sm:$0xff]  ;;  %v1809_v54 = vld [vmem:[#allocation3 + $0x100] sm:$0xff] }
  0xda   : > { %1022 = vst [vmem:[#allocation2 + $0x48] sm:$0x80] %v1021_v40  ;;  %3074 = vmatprep.mubr.msk.bf16.mxu1 %vm1088_vm1, %v1847_v61  ;;  %v1207_v22 = vld [vmem:[#allocation3 + $0x8] sm:$0xff]  ;;  %v1812_v50 = vld [vmem:[#allocation3 + $0x118] sm:$0xff]  ;;  %v1212_v13 = vld [vmem:[#allocation3 + $0x30] sm:$0xff] }
  0xdb   : > { %v1810_v52 = vld [vmem:[#allocation3 + $0x108] sm:$0xff] }
  0xdc   : > { %v859_v44 = vld [vmem:[#allocation2 + $0x80] sm:$0x1] }
  0xdd   : > { %v860_v18 = vsel %vm3615_vm8, 0, %v859_v44  ;;  %v984_v49 = vld [vmem:[#allocation2 + $0x70] sm:$0xff]  ;;  %3007 = vmatmul.mubr.msk.bf16.gmra.mrb[12].mxu0 %vm1088_vm1, %v1847_v61  ;;  %v4011_v44 = vld [vmem:[%s4282_s4] ss:$0 sm:$0xff] }
  0xde   : > { %v856_v31 = vld [vmem:[#allocation2 + $0x78] sm:$0x1]  ;;  %861 = vst [vmem:[#allocation2 + $0x80] sm:$0x1] %v860_v18  ;;  %v1029_v2 = vld [vmem:[#allocation2 + $0x60] sm:$0x80]  ;;  %v985_v14 = vsel %vm3643_vm11, %v921_v43, %v984_v49  ;;  %3010 = vmatprep.mubr.msk.bf16.mxu0 %vm1088_vm1, %v1246_v7  ;;  %3075 = vmatmul.mubr.msk.bf16.gmra.mrb[12].mxu1 %vm1088_vm1, %v1246_v7 }
  0xdf   : > { %v857_v57 = vsel %vm3615_vm8, 0, %v856_v31  ;;  %v981_v19 = vld [vmem:[#allocation2 + $0x68] sm:$0xff]  ;;  %v1030_v15 = vsel %vm3673_vm14, 0, %v1029_v2  ;;  %v1026_v3 = vld [vmem:[#allocation2 + $0x58] sm:$0x80]  ;;  %986 = vst [vmem:[#allocation2 + $0x70] sm:$0xff] %v985_v14 }
  0xe0   : > { %858 = vst [vmem:[#allocation2 + $0x78] sm:$0x1] %v857_v57  ;;  %v982_v45 = vsel %vm3643_vm11, %v919_v46, %v981_v19  ;;  %1031 = vst [vmem:[#allocation2 + $0x60] sm:$0x80] %v1030_v15  ;;  %v1027_v29 = vsel %vm3673_vm14, 0, %v1026_v3  ;;  %v1248_v23 = vld [vmem:[#allocation2 + $0x50] sm:$0xff] }
  0xe1   : > { %983 = vst [vmem:[#allocation2 + $0x68] sm:$0xff] %v982_v45  ;;  %1028 = vst [vmem:[#allocation2 + $0x58] sm:$0x80] %v1027_v29  ;;  %v1849_v58 = vld [vmem:[#allocation2 + $0x48] sm:$0xff]  ;;  %v1210_v43 = vld [vmem:[#allocation3 + $0x20] sm:$0xff] }
  0xe2   : > { %3078 = vmatprep.mubr.msk.bf16.mxu1 %vm1088_vm1, %v1849_v58  ;;  %v1213_v31 = vld [vmem:[#allocation3 + $0x38] sm:$0xff]  ;;  %v1211_v57 = vld [vmem:[#allocation3 + $0x28] sm:$0xff]  ;;  %v1815_v15 = vld [vmem:[#allocation3 + $0x130] sm:$0xff] }
  0xe5   : > { %v990_v32 = vld [vmem:[#allocation2 + $0x80] sm:$0xff]  ;;  %3011 = vmatmul.mubr.msk.bf16.gmra.mrb[16].mxu0 %vm1088_vm1, %v1849_v58 }
  0xe6   : > { %v1035_v51 = vld [vmem:[#allocation2 + $0x70] sm:$0x80]  ;;  %v991_v63 = vsel %vm3643_vm11, %v925_v60, %v990_v32  ;;  %3014 = vmatprep.mubr.msk.bf16.mxu0 %vm1088_vm1, %v1248_v23  ;;  %3079 = vmatmul.mubr.msk.bf16.gmra.mrb[16].mxu1 %vm1088_vm1, %v1248_v23 }
  0xe7   : > { %v987_v34 = vld [vmem:[#allocation2 + $0x78] sm:$0xff]  ;;  %v1036_v41 = vsel %vm3673_vm14, 0, %v1035_v51  ;;  %992 = vst [vmem:[#allocation2 + $0x80] sm:$0xff] %v991_v63  ;;  %v1250_v59 = vld [vmem:[#allocation2 + $0x60] sm:$0xff]  ;;  %v1813_v60 = vld [vmem:[#allocation3 + $0x120] sm:$0xff] }
  0xe8   : > { %v1032_v53 = vld [vmem:[#allocation2 + $0x68] sm:$0x80]  ;;  %v988_v0 = vsel %vm3643_vm11, %v923_v62, %v987_v34  ;;  %1037 = vst [vmem:[#allocation2 + $0x70] sm:$0x80] %v1036_v41  ;;  %v1851_v24 = vld [vmem:[#allocation2 + $0x58] sm:$0xff] }
  0xe9   : > { %v1033_v47 = vsel %vm3673_vm14, 0, %v1032_v53  ;;  %989 = vst [vmem:[#allocation2 + $0x78] sm:$0xff] %v988_v0  ;;  %3082 = vmatprep.mubr.msk.bf16.mxu1 %vm1088_vm1, %v1851_v24  ;;  %v1816_v63 = vld [vmem:[#allocation3 + $0x138] sm:$0xff] }
  0xea   : > { %1034 = vst [vmem:[#allocation2 + $0x68] sm:$0x80] %v1033_v47  ;;  %v1814_v47 = vld [vmem:[#allocation3 + $0x128] sm:$0xff] }
  0xed   : > { %3015 = vmatmul.mubr.msk.bf16.gmra.mrb[20].mxu0 %vm1088_vm1, %v1851_v24 }
  0xee   : > { %v1041_v1 = vld [vmem:[#allocation2 + $0x80] sm:$0x80]  ;;  %3018 = vmatprep.mubr.msk.bf16.mxu0 %vm1088_vm1, %v1250_v59  ;;  %3083 = vmatmul.mubr.msk.bf16.gmra.mrb[20].mxu1 %vm1088_vm1, %v1250_v59 }
  0xef   : > { %v1042_v39 = vsel %vm3673_vm14, 0, %v1041_v1  ;;  %v1252_v17 = vld [vmem:[#allocation2 + $0x70] sm:$0xff] }
  0xf0   : > { %v1038_v4 = vld [vmem:[#allocation2 + $0x78] sm:$0x80]  ;;  %1043 = vst [vmem:[#allocation2 + $0x80] sm:$0x80] %v1042_v39 }
  0xf1   : > { %v1039_v48 = vsel %vm3673_vm14, 0, %v1038_v4  ;;  %v1853_v6 = vld [vmem:[#allocation2 + $0x68] sm:$0xff]  ;;  %v1216_v4 = vld [vmem:[#allocation3 + $0x50] sm:$0xff] }
  0xf2   : > { %1040 = vst [vmem:[#allocation2 + $0x78] sm:$0x80] %v1039_v48  ;;  %3086 = vmatprep.mubr.msk.bf16.mxu1 %vm1088_vm1, %v1853_v6 }
  0xf5   : > { %3019 = vmatmul.mubr.msk.bf16.gmra.mrb[24].mxu0 %vm1088_vm1, %v1853_v6 }
  0xf6   : > { %3022 = vmatprep.mubr.msk.bf16.mxu0 %vm1088_vm1, %v1252_v17  ;;  %3087 = vmatmul.mubr.msk.bf16.gmra.mrb[24].mxu1 %vm1088_vm1, %v1252_v17 }
  0xf7   : > { %v1856_v9 = vld [vmem:[#allocation2 + $0x80] sm:$0xff] }
  0xf9   : > { %v1855_v8 = vld [vmem:[#allocation2 + $0x78] sm:$0xff] }
  0xfa   : > { %3090 = vmatprep.mubr.msk.bf16.mxu1 %vm1088_vm1, %v1855_v8 }
  0xfd   : > { %3023 = vmatmul.mubr.msk.bf16.gmra.mrb[28].mxu0 %vm1088_vm1, %v1855_v8 }
  0xfe   : > { %3028 = vmatprep.mubr.msk.bf16.mxu0 %vm1088_vm1, %v3844_v55  ;;  %3091 = vmatmul.mubr.msk.bf16.gmra.mrb[28].mxu1 %vm1088_vm1, %v1856_v9  ;;  %v2125_v55 = vld [vmem:[#allocation2 + $0x88] sm:$0xff] }
  0xff   : > { %3096 = vmatprep.mubr.msk.bf16.mxu1 %vm1088_vm1, %v3861_v16 }
 0x105   : > { %3029 = vmatmul.mubr.msk.bf16.vlgmr.msra.gmra.mrb[0].mxu0 %vm1088_vm1, %v3861_v16  ;;  %v1208_v16 = vld [vmem:[#allocation3 + $0x10] sm:$0xff] }
 0x106   : > { %3032 = vmatprep.mubr.msk.bf16.mxu0 %vm1088_vm1, %v3871_v42  ;;  %3097 = vmatmul.mubr.msk.bf16.vlgmr.msra.gmra.mrb[0].mxu1 %vm1088_vm1, %v3871_v42 }
 0x107   : > { %3100 = vmatprep.mubr.msk.bf16.mxu1 %vm1088_vm1, %v3888_v28 }
 0x10d   : > { %3033 = vmatmul.mubr.msk.bf16.gmra.mrb[4].mxu0 %vm1088_vm1, %v3888_v28 }
 0x10e   : > { %3036 = vmatprep.mubr.msk.bf16.mxu0 %vm1088_vm1, %v3902_v38  ;;  %3101 = vmatmul.mubr.msk.bf16.gmra.mrb[4].mxu1 %vm1088_vm1, %v3902_v38 }
 0x10f   : > { %3104 = vmatprep.mubr.msk.bf16.mxu1 %vm1088_vm1, %v3912_v56 }
 0x115   : > { %3037 = vmatmul.mubr.msk.bf16.gmra.mrb[8].mxu0 %vm1088_vm1, %v3912_v56 }
 0x116   : > { %3040 = vmatprep.mubr.msk.bf16.mxu0 %vm1088_vm1, %v1847_v61  ;;  %3105 = vmatmul.mubr.msk.bf16.gmra.mrb[8].mxu1 %vm1088_vm1, %v1847_v61 }
 0x117   : > { %3108 = vmatprep.mubr.msk.bf16.mxu1 %vm1088_vm1, %v1246_v7 }
 0x11d   : > { %3041 = vmatmul.mubr.msk.bf16.gmra.mrb[12].mxu0 %vm1088_vm1, %v1246_v7 }
 0x11e   : > { %3044 = vmatprep.mubr.msk.bf16.mxu0 %vm1088_vm1, %v1849_v58  ;;  %3109 = vmatmul.mubr.msk.bf16.gmra.mrb[12].mxu1 %vm1088_vm1, %v1849_v58 }
 0x11f   : > { %3112 = vmatprep.mubr.msk.bf16.mxu1 %vm1088_vm1, %v1248_v23 }
 0x125   : > { %3045 = vmatmul.mubr.msk.bf16.gmra.mrb[16].mxu0 %vm1088_vm1, %v1248_v23 }
 0x126   : > { %3048 = vmatprep.mubr.msk.bf16.mxu0 %vm1088_vm1, %v1851_v24  ;;  %3113 = vmatmul.mubr.msk.bf16.gmra.mrb[16].mxu1 %vm1088_vm1, %v1851_v24 }
 0x127   : > { %3116 = vmatprep.mubr.msk.bf16.mxu1 %vm1088_vm1, %v1250_v59 }
 0x12d   : > { %3049 = vmatmul.mubr.msk.bf16.gmra.mrb[20].mxu0 %vm1088_vm1, %v1250_v59 }
 0x12e   : > { %3052 = vmatprep.mubr.msk.bf16.mxu0 %vm1088_vm1, %v1853_v6  ;;  %3117 = vmatmul.mubr.msk.bf16.gmra.mrb[20].mxu1 %vm1088_vm1, %v1853_v6 }
 0x12f   : > { %3120 = vmatprep.mubr.msk.bf16.mxu1 %vm1088_vm1, %v1252_v17 }
 0x135   : > { %3053 = vmatmul.mubr.msk.bf16.gmra.mrb[24].mxu0 %vm1088_vm1, %v1252_v17  ;;  %v1214_v17 = vld [vmem:[#allocation3 + $0x40] sm:$0xff] }
 0x136   : > { %3056 = vmatprep.mubr.msk.bf16.mxu0 %vm1088_vm1, %v1855_v8  ;;  %3121 = vmatmul.mubr.msk.bf16.gmra.mrb[24].mxu1 %vm1088_vm1, %v1855_v8 }
 0x137   : > { %3124 = vmatprep.mubr.msk.bf16.mxu1 %vm1088_vm1, %v1856_v9 }
 0x13d   : > { %3057 = vmatmul.mubr.msk.bf16.gmra.mrb[28].mxu0 %vm1088_vm1, %v1856_v9 }
 0x13e   : > { %3125 = vmatmul.mubr.msk.bf16.gmra.mrb[28].mxu1 %vm1088_vm1, %v2125_v55 }
 0x1d8   : > { %v3030_v42 = vpop.f32.mrb[0].mxu0 }
 0x1d9   : > { %v3128_v12 = vadd.f32 %v3030_v42, %v1208_v16  ;;  %v1616_v21 = vpop.f32.mrb[1].mxu0  ;;  %v3098_v28 = vpop.f32.mrb[0].mxu1 }
 0x1da   : > { %v3129_v27 = vadd.f32 %v1616_v21, %v1206_v10  ;;  %v3031_v25 = vpop.f32.mrb[2].mxu0  ;;  %v3160_v35 = vadd.f32 %v3098_v28, %v1811_v26  ;;  %v2219_v36 = vpop.f32.mrb[1].mxu1  ;;  %v1217_v10 = vld [vmem:[#allocation3 + $0x58] sm:$0xff] }
 0x1db   : > { %1778 = vst.msk [vmem:[#allocation3 + $0x10] sm:$0xff] %vm1141_vm15, %v3128_v12  ;;  %v3130_v20 = vadd.f32 %v3031_v25, %v1209_v11  ;;  %v1619_v30 = vpop.f32.mrb[3].mxu0  ;;  %v3161_v5 = vadd.f32 %v2219_v36, %v1809_v54  ;;  %v3099_v37 = vpop.f32.mrb[2].mxu1 }
 0x1dc   : > { %1776 = vst.msk [vmem:[#allocation3] sm:$0xff] %vm1141_vm15, %v3129_v27  ;;  %v3131_v33 = vadd.f32 %v1619_v30, %v1207_v22  ;;  %2380 = vst.msk [vmem:[#allocation3 + $0x110] sm:$0xff] %vm1141_vm15, %v3160_v35  ;;  %v3162_v38 = vadd.f32 %v3099_v37, %v1812_v50  ;;  %v2222_v40 = vpop.f32.mrb[3].mxu1  ;;  %v1215_v22 = vld [vmem:[#allocation3 + $0x48] sm:$0xff]  ;;  %v1819_v30 = vld [vmem:[#allocation3 + $0x150] sm:$0xff] }
 0x1dd   : > { %1779 = vst.msk [vmem:[#allocation3 + $0x18] sm:$0xff] %vm1141_vm15, %v3130_v20  ;;  %2378 = vst.msk [vmem:[#allocation3 + $0x100] sm:$0xff] %vm1141_vm15, %v3161_v5  ;;  %v3163_v46 = vadd.f32 %v2222_v40, %v1810_v52  ;;  %v1817_v35 = vld [vmem:[#allocation3 + $0x140] sm:$0xff] }
 0x1de   : > { %1777 = vst.msk [vmem:[#allocation3 + $0x8] sm:$0xff] %vm1141_vm15, %v3131_v33  ;;  %2381 = vst.msk [vmem:[#allocation3 + $0x118] sm:$0xff] %vm1141_vm15, %v3162_v38 }
 0x1df   : > { %2379 = vst.msk [vmem:[#allocation3 + $0x108] sm:$0xff] %vm1141_vm15, %v3163_v46 }
 0x1e0   : > { %v3034_v18 = vpop.f32.mrb[4].mxu0 }
 0x1e1   : > { %v3132_v49 = vadd.f32 %v3034_v18, %v1212_v13  ;;  %v1632_v56 = vpop.f32.mrb[5].mxu0  ;;  %v3102_v51 = vpop.f32.mrb[4].mxu1  ;;  %v1820_v13 = vld [vmem:[#allocation3 + $0x158] sm:$0xff]  ;;  %v1818_v18 = vld [vmem:[#allocation3 + $0x148] sm:$0xff] }
 0x1e2   : > { %v2416_v2 = vld [vmem:[#allocation3 + $0x10] sm:$0xff]  ;;  %v3133_v14 = vadd.f32 %v1632_v56, %v1210_v43  ;;  %v3035_v19 = vpop.f32.mrb[6].mxu0  ;;  %v3164_v53 = vadd.f32 %v3102_v51, %v1815_v15  ;;  %v2235_v0 = vpop.f32.mrb[5].mxu1 }
 0x1e3   : > { %v2454_v3 = vadd.f32 %v4011_v44, %v2416_v2  ;;  %v2414_v45 = vld [vmem:[#allocation3] sm:$0xff]  ;;  %1782 = vst.msk [vmem:[#allocation3 + $0x30] sm:$0xff] %vm1141_vm15, %v3132_v49  ;;  %v3134_v29 = vadd.f32 %v3035_v19, %v1213_v31  ;;  %v1635_v61 = vpop.f32.mrb[7].mxu0  ;;  %v2518_v23 = vld [vmem:[#allocation3 + $0x110] sm:$0xff]  ;;  %v3165_v1 = vadd.f32 %v2235_v0, %v1813_v60  ;;  %v3103_v39 = vpop.f32.mrb[6].mxu1 }
 0x1e4   : > { %v2452_v62 = vadd.f32 %v4011_v44, %v2414_v45  ;;  %v2417_v32 = vld [vmem:[#allocation3 + $0x18] sm:$0xff]  ;;  %1780 = vst.msk [vmem:[#allocation3 + $0x20] sm:$0xff] %vm1141_vm15, %v3133_v14  ;;  %v3135_v7 = vadd.f32 %v1635_v61, %v1211_v57  ;;  %v2550_v48 = vadd.f32 %v4011_v44, %v2518_v23  ;;  %v2516_v24 = vld [vmem:[#allocation3 + $0x100] sm:$0xff]  ;;  %2384 = vst.msk [vmem:[#allocation3 + $0x130] sm:$0xff] %vm1141_vm15, %v3164_v53  ;;  %v2238_v6 = vpop.f32.mrb[7].mxu1 }
 0x1e5   : > { %2486 = vst.msk [vmem:[%s4018_s14 + $0x20] sm:$0xff] %vm1141_vm15, %v2454_v3  ;;  %v2455_v34 = vadd.f32 %v4011_v44, %v2417_v32  ;;  %v2415_v41 = vld [vmem:[#allocation3 + $0x8] sm:$0xff]  ;;  %1783 = vst.msk [vmem:[#allocation3 + $0x38] sm:$0xff] %vm1141_vm15, %v3134_v29  ;;  %v3166_v59 = vadd.f32 %v3103_v39, %v1816_v63  ;;  %v2548_v8 = vadd.f32 %v4011_v44, %v2516_v24  ;;  %v2519_v9 = vld [vmem:[#allocation3 + $0x118] sm:$0xff] }
 0x1e6   : > { %2484 = vst.msk [vmem:[%s4018_s14] sm:$0xff] %vm1141_vm15, %v2452_v62  ;;  %v2453_v58 = vadd.f32 %v4011_v44, %v2415_v41  ;;  %1781 = vst.msk [vmem:[#allocation3 + $0x28] sm:$0xff] %vm1141_vm15, %v3135_v7  ;;  %v3167_v55 = vadd.f32 %v2238_v6, %v1814_v47  ;;  %v2551_v42 = vadd.f32 %v4011_v44, %v2519_v9  ;;  %v2517_v11 = vld [vmem:[#allocation3 + $0x108] sm:$0xff]  ;;  %v1220_v2 = vld [vmem:[#allocation3 + $0x70] sm:$0xff] }
 0x1e7   : > { %2487 = vst.msk [vmem:[%s4018_s14 + $0x28] sm:$0xff] %vm1141_vm15, %v2455_v34  ;;  %2382 = vst.msk [vmem:[#allocation3 + $0x120] sm:$0xff] %vm1141_vm15, %v3165_v1  ;;  %v2549_v27 = vadd.f32 %v4011_v44, %v2517_v11  ;;  %v1218_v45 = vld [vmem:[#allocation3 + $0x60] sm:$0xff]  ;;  %v1221_v32 = vld [vmem:[#allocation3 + $0x78] sm:$0xff] }
 0x1e8   : > { %2485 = vst.msk [vmem:[%s4018_s14 + $0x8] sm:$0xff] %vm1141_vm15, %v2453_v58  ;;  %v3038_v16 = vpop.f32.mrb[8].mxu0  ;;  %2887 = vst.msk [vmem:[%s4018_s14 + $0x30] sm:$0xff] %vm1141_vm15, %v2550_v48  ;;  %v1219_v41 = vld [vmem:[#allocation3 + $0x68] sm:$0xff]  ;;  %v1823_v23 = vld [vmem:[#allocation3 + $0x170] sm:$0xff] }
 0x1e9   : > { %2385 = vst.msk [vmem:[#allocation3 + $0x138] sm:$0xff] %vm1141_vm15, %v3166_v59  ;;  %v3136_v12 = vadd.f32 %v3038_v16, %v1216_v4  ;;  %v1648_v21 = vpop.f32.mrb[9].mxu0  ;;  %2885 = vst.msk [vmem:[%s4018_s14 + $0x10] sm:$0xff] %vm1141_vm15, %v2548_v8  ;;  %v3106_v37 = vpop.f32.mrb[8].mxu1  ;;  %v1821_v24 = vld [vmem:[#allocation3 + $0x160] sm:$0xff]  ;;  %v1824_v9 = vld [vmem:[#allocation3 + $0x178] sm:$0xff] }
 0x1ea   : > { %v2420_v25 = vld [vmem:[#allocation3 + $0x30] sm:$0xff]  ;;  %2383 = vst.msk [vmem:[#allocation3 + $0x128] sm:$0xff] %vm1141_vm15, %v3167_v55  ;;  %v3137_v26 = vadd.f32 %v1648_v21, %v1214_v17  ;;  %v3039_v20 = vpop.f32.mrb[10].mxu0  ;;  %2888 = vst.msk [vmem:[%s4018_s14 + $0x38] sm:$0xff] %vm1141_vm15, %v2551_v42  ;;  %v3168_v43 = vadd.f32 %v3106_v37, %v1819_v30  ;;  %v2251_v46 = vpop.f32.mrb[9].mxu1  ;;  %v1822_v11 = vld [vmem:[#allocation3 + $0x168] sm:$0xff] }
 0x1eb   : > { %v2458_v54 = vadd.f32 %v4011_v44, %v2420_v25  ;;  %v2418_v33 = vld [vmem:[#allocation3 + $0x20] sm:$0xff]  ;;  %1786 = vst.msk [vmem:[#allocation3 + $0x50] sm:$0xff] %vm1141_vm15, %v3136_v12  ;;  %v3138_v28 = vadd.f32 %v3039_v20, %v1217_v10  ;;  %v1651_v50 = vpop.f32.mrb[11].mxu0  ;;  %2886 = vst.msk [vmem:[%s4018_s14 + $0x18] sm:$0xff] %vm1141_vm15, %v2549_v27  ;;  %v2522_v49 = vld [vmem:[#allocation3 + $0x130] sm:$0xff]  ;;  %v3169_v56 = vadd.f32 %v2251_v46, %v1817_v35  ;;  %v3107_v57 = vpop.f32.mrb[10].mxu1 }
 0x1ec   : > { %v2456_v36 = vadd.f32 %v4011_v44, %v2418_v33  ;;  %v2421_v52 = vld [vmem:[#allocation3 + $0x38] sm:$0xff]  ;;  %1784 = vst.msk [vmem:[#allocation3 + $0x40] sm:$0xff] %vm1141_vm15, %v3137_v26  ;;  %v3139_v5 = vadd.f32 %v1651_v50, %v1215_v22  ;;  %v2554_v14 = vadd.f32 %v4011_v44, %v2522_v49  ;;  %2388 = vst.msk [vmem:[#allocation3 + $0x150] sm:$0xff] %vm1141_vm15, %v3168_v43  ;;  %v2254_v3 = vpop.f32.mrb[11].mxu1  ;;  %v1224_v25 = vld [vmem:[#allocation3 + $0x90] sm:$0xff] }
 0x1ed   : > { %2490 = vst.msk [vmem:[%s4018_s14 + $0x60] sm:$0xff] %vm1141_vm15, %v2458_v54  ;;  %v2459_v38 = vadd.f32 %v4011_v44, %v2421_v52  ;;  %v2419_v40 = vld [vmem:[#allocation3 + $0x28] sm:$0xff]  ;;  %1787 = vst.msk [vmem:[#allocation3 + $0x58] sm:$0xff] %vm1141_vm15, %v3138_v28  ;;  %v3170_v15 = vadd.f32 %v3107_v57, %v1820_v13  ;;  %v3171_v60 = vadd.f32 %v2254_v3, %v1818_v18  ;;  %v1222_v33 = vld [vmem:[#allocation3 + $0x80] sm:$0xff] }
 0x1ee   : > { %2488 = vst.msk [vmem:[%s4018_s14 + $0x40] sm:$0xff] %vm1141_vm15, %v2456_v36  ;;  %v2457_v31 = vadd.f32 %v4011_v44, %v2419_v40  ;;  %1785 = vst.msk [vmem:[#allocation3 + $0x48] sm:$0xff] %vm1141_vm15, %v3139_v5  ;;  %v2520_v19 = vld [vmem:[#allocation3 + $0x120] sm:$0xff]  ;;  %v1225_v52 = vld [vmem:[#allocation3 + $0x98] sm:$0xff] }
 0x1ef   : > { %2491 = vst.msk [vmem:[%s4018_s14 + $0x68] sm:$0xff] %vm1141_vm15, %v2459_v38  ;;  %v2552_v29 = vadd.f32 %v4011_v44, %v2520_v19  ;;  %2386 = vst.msk [vmem:[#allocation3 + $0x140] sm:$0xff] %vm1141_vm15, %v3169_v56  ;;  %v1223_v40 = vld [vmem:[#allocation3 + $0x88] sm:$0xff]  ;;  %v1827_v49 = vld [vmem:[#allocation3 + $0x190] sm:$0xff] }
 0x1f0   : > { %2489 = vst.msk [vmem:[%s4018_s14 + $0x48] sm:$0xff] %vm1141_vm15, %v2457_v31  ;;  %v2523_v61 = vld [vmem:[#allocation3 + $0x138] sm:$0xff]  ;;  %v3042_v62 = vpop.f32.mrb[12].mxu0  ;;  %2891 = vst.msk [vmem:[%s4018_s14 + $0x70] sm:$0xff] %vm1141_vm15, %v2554_v14  ;;  %v1825_v19 = vld [vmem:[#allocation3 + $0x180] sm:$0xff] }
 0x1f1   : > { %v2555_v7 = vadd.f32 %v4011_v44, %v2523_v61  ;;  %v2521_v51 = vld [vmem:[#allocation3 + $0x128] sm:$0xff]  ;;  %2389 = vst.msk [vmem:[#allocation3 + $0x158] sm:$0xff] %vm1141_vm15, %v3170_v15  ;;  %v3140_v63 = vadd.f32 %v3042_v62, %v1220_v2  ;;  %v1664_v34 = vpop.f32.mrb[13].mxu0  ;;  %2889 = vst.msk [vmem:[%s4018_s14 + $0x50] sm:$0xff] %vm1141_vm15, %v2552_v29  ;;  %v3110_v8 = vpop.f32.mrb[12].mxu1  ;;  %v1828_v61 = vld [vmem:[#allocation3 + $0x198] sm:$0xff] }
 0x1f2   : > { %v2553_v53 = vadd.f32 %v4011_v44, %v2521_v51  ;;  %v2424_v0 = vld [vmem:[#allocation3 + $0x50] sm:$0xff]  ;;  %2387 = vst.msk [vmem:[#allocation3 + $0x148] sm:$0xff] %vm1141_vm15, %v3171_v60  ;;  %v3141_v47 = vadd.f32 %v1664_v34, %v1218_v45  ;;  %v3043_v58 = vpop.f32.mrb[14].mxu0  ;;  %v3172_v10 = vadd.f32 %v3110_v8, %v1823_v23  ;;  %v2267_v42 = vpop.f32.mrb[13].mxu1  ;;  %v1826_v51 = vld [vmem:[#allocation3 + $0x188] sm:$0xff] }
 0x1f3   : > { %2892 = vst.msk [vmem:[%s4018_s14 + $0x78] sm:$0xff] %vm1141_vm15, %v2555_v7  ;;  %v2462_v1 = vadd.f32 %v4011_v44, %v2424_v0  ;;  %v2422_v39 = vld [vmem:[#allocation3 + $0x40] sm:$0xff]  ;;  %1790 = vst.msk [vmem:[#allocation3 + $0x70] sm:$0xff] %vm1141_vm15, %v3140_v63  ;;  %v3142_v4 = vadd.f32 %v3043_v58, %v1221_v32  ;;  %v1667_v48 = vpop.f32.mrb[15].mxu0  ;;  %v2526_v21 = vld [vmem:[#allocation3 + $0x150] sm:$0xff]  ;;  %v3173_v22 = vadd.f32 %v2267_v42, %v1821_v24  ;;  %v3111_v27 = vpop.f32.mrb[14].mxu1 }
 0x1f4   : > { %2890 = vst.msk [vmem:[%s4018_s14 + $0x58] sm:$0xff] %vm1141_vm15, %v2553_v53  ;;  %v2460_v59 = vadd.f32 %v4011_v44, %v2422_v39  ;;  %v2425_v6 = vld [vmem:[#allocation3 + $0x58] sm:$0xff]  ;;  %1788 = vst.msk [vmem:[#allocation3 + $0x60] sm:$0xff] %vm1141_vm15, %v3141_v47  ;;  %v3143_v17 = vadd.f32 %v1667_v48, %v1219_v41  ;;  %v2558_v26 = vadd.f32 %v4011_v44, %v2526_v21  ;;  %v2270_v54 = vpop.f32.mrb[15].mxu1  ;;  %v1228_v0 = vld [vmem:[#allocation3 + $0xb0] sm:$0xff] }
 0x1f5   : > { %2494 = vst.msk [vmem:[%s4018_s14 + $0xa0] sm:$0xff] %vm1141_vm15, %v2462_v1  ;;  %v2463_v55 = vadd.f32 %v4011_v44, %v2425_v6  ;;  %v2423_v16 = vld [vmem:[#allocation3 + $0x48] sm:$0xff]  ;;  %1791 = vst.msk [vmem:[#allocation3 + $0x78] sm:$0xff] %vm1141_vm15, %v3142_v4  ;;  %v3174_v30 = vadd.f32 %v3111_v27, %v1824_v9  ;;  %v3175_v35 = vadd.f32 %v2270_v54, %v1822_v11  ;;  %v1226_v39 = vld [vmem:[#allocation3 + $0xa0] sm:$0xff] }
 0x1f6   : > { %2492 = vst.msk [vmem:[%s4018_s14 + $0x80] sm:$0xff] %vm1141_vm15, %v2460_v59  ;;  %v2461_v12 = vadd.f32 %v4011_v44, %v2423_v16  ;;  %1789 = vst.msk [vmem:[#allocation3 + $0x68] sm:$0xff] %vm1141_vm15, %v3143_v17  ;;  %v2524_v20 = vld [vmem:[#allocation3 + $0x140] sm:$0xff]  ;;  %v1229_v6 = vld [vmem:[#allocation3 + $0xb8] sm:$0xff] }
 0x1f7   : > { %2495 = vst.msk [vmem:[%s4018_s14 + $0xa8] sm:$0xff] %vm1141_vm15, %v2463_v55  ;;  %2392 = vst.msk [vmem:[#allocation3 + $0x170] sm:$0xff] %vm1141_vm15, %v3172_v10  ;;  %v2556_v28 = vadd.f32 %v4011_v44, %v2524_v20  ;;  %v1227_v16 = vld [vmem:[#allocation3 + $0xa8] sm:$0xff]  ;;  %v1831_v21 = vld [vmem:[#allocation3 + $0x1b0] sm:$0xff] }
 0x1f8   : > { %2493 = vst.msk [vmem:[%s4018_s14 + $0x88] sm:$0xff] %vm1141_vm15, %v2461_v12  ;;  %v2527_v50 = vld [vmem:[#allocation3 + $0x158] sm:$0xff]  ;;  %2390 = vst.msk [vmem:[#allocation3 + $0x160] sm:$0xff] %vm1141_vm15, %v3173_v22  ;;  %v3046_v36 = vpop.f32.mrb[16].mxu0  ;;  %v1829_v20 = vld [vmem:[#allocation3 + $0x1a0] sm:$0xff] }
 0x1f9   : > { %2895 = vst.msk [vmem:[%s4018_s14 + $0xb0] sm:$0xff] %vm1141_vm15, %v2558_v26  ;;  %v2559_v5 = vadd.f32 %v4011_v44, %v2527_v50  ;;  %v2525_v37 = vld [vmem:[#allocation3 + $0x148] sm:$0xff]  ;;  %2393 = vst.msk [vmem:[#allocation3 + $0x178] sm:$0xff] %vm1141_vm15, %v3174_v30  ;;  %v3144_v13 = vadd.f32 %v3046_v36, %v1224_v25  ;;  %v1680_v38 = vpop.f32.mrb[17].mxu0  ;;  %v3114_v29 = vpop.f32.mrb[16].mxu1  ;;  %v1832_v50 = vld [vmem:[#allocation3 + $0x1b8] sm:$0xff] }
 0x1fa   : > { %2893 = vst.msk [vmem:[%s4018_s14 + $0x90] sm:$0xff] %vm1141_vm15, %v2556_v28  ;;  %v2557_v43 = vadd.f32 %v4011_v44, %v2525_v37  ;;  %v2428_v46 = vld [vmem:[#allocation3 + $0x70] sm:$0xff]  ;;  %2391 = vst.msk [vmem:[#allocation3 + $0x168] sm:$0xff] %vm1141_vm15, %v3175_v35  ;;  %v3145_v18 = vadd.f32 %v1680_v38, %v1222_v33  ;;  %v3047_v31 = vpop.f32.mrb[18].mxu0  ;;  %v3176_v32 = vadd.f32 %v3114_v29, %v1827_v49  ;;  %v2283_v7 = vpop.f32.mrb[17].mxu1  ;;  %v1830_v37 = vld [vmem:[#allocation3 + $0x1a8] sm:$0xff] }
 0x1fb   : > { %2896 = vst.msk [vmem:[%s4018_s14 + $0xb8] sm:$0xff] %vm1141_vm15, %v2559_v5  ;;  %v2466_v56 = vadd.f32 %v4011_v44, %v2428_v46  ;;  %v2426_v57 = vld [vmem:[#allocation3 + $0x60] sm:$0xff]  ;;  %1794 = vst.msk [vmem:[#allocation3 + $0x90] sm:$0xff] %vm1141_vm15, %v3144_v13  ;;  %v3146_v2 = vadd.f32 %v3047_v31, %v1225_v52  ;;  %v1683_v14 = vpop.f32.mrb[19].mxu0  ;;  %v3177_v41 = vadd.f32 %v2283_v7, %v1825_v19  ;;  %v3115_v53 = vpop.f32.mrb[18].mxu1  ;;  %v1232_v46 = vld [vmem:[#allocation3 + $0xd0] sm:$0xff] }
 0x1fc   : > { %2894 = vst.msk [vmem:[%s4018_s14 + $0x98] sm:$0xff] %vm1141_vm15, %v2557_v43  ;;  %v2464_v15 = vadd.f32 %v4011_v44, %v2426_v57  ;;  %v2429_v3 = vld [vmem:[#allocation3 + $0x78] sm:$0xff]  ;;  %1792 = vst.msk [vmem:[#allocation3 + $0x80] sm:$0xff] %vm1141_vm15, %v3145_v18  ;;  %v3147_v45 = vadd.f32 %v1683_v14, %v1223_v40  ;;  %v3178_v23 = vadd.f32 %v3115_v53, %v1828_v61  ;;  %v2286_v1 = vpop.f32.mrb[19].mxu1  ;;  %v1230_v57 = vld [vmem:[#allocation3 + $0xc0] sm:$0xff] }
 0x1fd   : > { %2498 = vst.msk [vmem:[%s4018_s14 + $0xe0] sm:$0xff] %vm1141_vm15, %v2466_v56  ;;  %v2467_v60 = vadd.f32 %v4011_v44, %v2429_v3  ;;  %v2427_v62 = vld [vmem:[#allocation3 + $0x68] sm:$0xff]  ;;  %1795 = vst.msk [vmem:[#allocation3 + $0x98] sm:$0xff] %vm1141_vm15, %v3146_v2  ;;  %v3179_v24 = vadd.f32 %v2286_v1, %v1826_v51  ;;  %v1233_v3 = vld [vmem:[#allocation3 + $0xd8] sm:$0xff] }
 0x1fe   : > { %2496 = vst.msk [vmem:[%s4018_s14 + $0xc0] sm:$0xff] %vm1141_vm15, %v2464_v15  ;;  %v2465_v63 = vadd.f32 %v4011_v44, %v2427_v62  ;;  %v2530_v34 = vld [vmem:[#allocation3 + $0x170] sm:$0xff]  ;;  %1793 = vst.msk [vmem:[#allocation3 + $0x88] sm:$0xff] %vm1141_vm15, %v3147_v45  ;;  %v1231_v62 = vld [vmem:[#allocation3 + $0xc8] sm:$0xff] }
 0x1ff   : > { %2499 = vst.msk [vmem:[%s4018_s14 + $0xe8] sm:$0xff] %vm1141_vm15, %v2467_v60  ;;  %v2562_v47 = vadd.f32 %v4011_v44, %v2530_v34  ;;  %v2528_v58 = vld [vmem:[#allocation3 + $0x160] sm:$0xff]  ;;  %2396 = vst.msk [vmem:[#allocation3 + $0x190] sm:$0xff] %vm1141_vm15, %v3176_v32  ;;  %v1835_v34 = vld [vmem:[#allocation3 + $0x1d0] sm:$0xff] }
 0x200   : > { %2497 = vst.msk [vmem:[%s4018_s14 + $0xc8] sm:$0xff] %vm1141_vm15, %v2465_v63  ;;  %v2560_v4 = vadd.f32 %v4011_v44, %v2528_v58  ;;  %v2531_v48 = vld [vmem:[#allocation3 + $0x178] sm:$0xff]  ;;  %2394 = vst.msk [vmem:[#allocation3 + $0x180] sm:$0xff] %vm1141_vm15, %v3177_v41  ;;  %v3050_v59 = vpop.f32.mrb[20].mxu0  ;;  %v1833_v58 = vld [vmem:[#allocation3 + $0x1c0] sm:$0xff] }
 0x201   : > { %2899 = vst.msk [vmem:[%s4018_s14 + $0xf0] sm:$0xff] %vm1141_vm15, %v2562_v47  ;;  %v2563_v17 = vadd.f32 %v4011_v44, %v2531_v48  ;;  %v2529_v8 = vld [vmem:[#allocation3 + $0x168] sm:$0xff]  ;;  %2397 = vst.msk [vmem:[#allocation3 + $0x198] sm:$0xff] %vm1141_vm15, %v3178_v23  ;;  %v3148_v9 = vadd.f32 %v3050_v59, %v1228_v0  ;;  %v1696_v55 = vpop.f32.mrb[21].mxu0  ;;  %v3118_v28 = vpop.f32.mrb[20].mxu1  ;;  %v1836_v48 = vld [vmem:[#allocation3 + $0x1d8] sm:$0xff] }
 0x202   : > { %2897 = vst.msk [vmem:[%s4018_s14 + $0xd0] sm:$0xff] %vm1141_vm15, %v2560_v4  ;;  %v2561_v10 = vadd.f32 %v4011_v44, %v2529_v8  ;;  %v2432_v42 = vld [vmem:[#allocation3 + $0x90] sm:$0xff]  ;;  %2395 = vst.msk [vmem:[#allocation3 + $0x188] sm:$0xff] %vm1141_vm15, %v3179_v24  ;;  %v3149_v11 = vadd.f32 %v1696_v55, %v1226_v39  ;;  %v3051_v12 = vpop.f32.mrb[22].mxu0  ;;  %v3180_v52 = vadd.f32 %v3118_v28, %v1831_v21  ;;  %v2299_v5 = vpop.f32.mrb[21].mxu1  ;;  %v1834_v8 = vld [vmem:[#allocation3 + $0x1c8] sm:$0xff] }
 0x203   : > { %2900 = vst.msk [vmem:[%s4018_s14 + $0xf8] sm:$0xff] %vm1141_vm15, %v2563_v17  ;;  %v2470_v22 = vadd.f32 %v4011_v44, %v2432_v42  ;;  %v2430_v27 = vld [vmem:[#allocation3 + $0x80] sm:$0xff]  ;;  %1798 = vst.msk [vmem:[#allocation3 + $0xb0] sm:$0xff] %vm1141_vm15, %v3148_v9  ;;  %v3150_v25 = vadd.f32 %v3051_v12, %v1229_v6  ;;  %v1699_v26 = vpop.f32.mrb[23].mxu0  ;;  %v3181_v40 = vadd.f32 %v2299_v5, %v1829_v20  ;;  %v3119_v43 = vpop.f32.mrb[22].mxu1  ;;  %v1236_v42 = vld [vmem:[#allocation3 + $0xf0] sm:$0xff] }
 0x204   : > { %2898 = vst.msk [vmem:[%s4018_s14 + $0xd8] sm:$0xff] %vm1141_vm15, %v2561_v10  ;;  %v2468_v30 = vadd.f32 %v4011_v44, %v2430_v27  ;;  %v2433_v54 = vld [vmem:[#allocation3 + $0x98] sm:$0xff]  ;;  %1796 = vst.msk [vmem:[#allocation3 + $0xa0] sm:$0xff] %vm1141_vm15, %v3149_v11  ;;  %v3151_v33 = vadd.f32 %v1699_v26, %v1227_v16  ;;  %v3182_v49 = vadd.f32 %v3119_v43, %v1832_v50  ;;  %v2302_v56 = vpop.f32.mrb[23].mxu1  ;;  %v1234_v27 = vld [vmem:[#allocation3 + $0xe0] sm:$0xff] }
 0x205   : > { %2502 = vst.msk [vmem:[%s4018_s14 + $0x120] sm:$0xff] %vm1141_vm15, %v2470_v22  ;;  %v2471_v35 = vadd.f32 %v4011_v44, %v2433_v54  ;;  %v2431_v36 = vld [vmem:[#allocation3 + $0x88] sm:$0xff]  ;;  %1799 = vst.msk [vmem:[#allocation3 + $0xb8] sm:$0xff] %vm1141_vm15, %v3150_v25  ;;  %v3183_v19 = vadd.f32 %v2302_v56, %v1830_v37  ;;  %v1237_v54 = vld [vmem:[#allocation3 + $0xf8] sm:$0xff] }
 0x206   : > { %2500 = vst.msk [vmem:[%s4018_s14 + $0x100] sm:$0xff] %vm1141_vm15, %v2468_v30  ;;  %v2469_v13 = vadd.f32 %v4011_v44, %v2431_v36  ;;  %v2534_v38 = vld [vmem:[#allocation3 + $0x190] sm:$0xff]  ;;  %1797 = vst.msk [vmem:[#allocation3 + $0xa8] sm:$0xff] %vm1141_vm15, %v3151_v33  ;;  %v1235_v36 = vld [vmem:[#allocation3 + $0xe8] sm:$0xff] }
 0x207   : > { %2503 = vst.msk [vmem:[%s4018_s14 + $0x128] sm:$0xff] %vm1141_vm15, %v2471_v35  ;;  %v2566_v18 = vadd.f32 %v4011_v44, %v2534_v38  ;;  %v2532_v31 = vld [vmem:[#allocation3 + $0x180] sm:$0xff]  ;;  %2400 = vst.msk [vmem:[#allocation3 + $0x1b0] sm:$0xff] %vm1141_vm15, %v3180_v52  ;;  %v1839_v38 = vld [vmem:[#allocation3 + $0x1f0] sm:$0xff] }
 0x208   : > { %2501 = vst.msk [vmem:[%s4018_s14 + $0x108] sm:$0xff] %vm1141_vm15, %v2469_v13  ;;  %v2564_v2 = vadd.f32 %v4011_v44, %v2532_v31  ;;  %v2535_v14 = vld [vmem:[#allocation3 + $0x198] sm:$0xff]  ;;  %2398 = vst.msk [vmem:[#allocation3 + $0x1a0] sm:$0xff] %vm1141_vm15, %v3181_v40  ;;  %v3054_v15 = vpop.f32.mrb[24].mxu0  ;;  %v1837_v31 = vld [vmem:[#allocation3 + $0x1e0] sm:$0xff] }
 0x209   : > { %2903 = vst.msk [vmem:[%s4018_s14 + $0x130] sm:$0xff] %vm1141_vm15, %v2566_v18  ;;  %v2567_v45 = vadd.f32 %v4011_v44, %v2535_v14  ;;  %v2533_v29 = vld [vmem:[#allocation3 + $0x188] sm:$0xff]  ;;  %2401 = vst.msk [vmem:[#allocation3 + $0x1b8] sm:$0xff] %vm1141_vm15, %v3182_v49  ;;  %v3152_v61 = vadd.f32 %v3054_v15, %v1232_v46  ;;  %v1712_v60 = vpop.f32.mrb[25].mxu0  ;;  %v3122_v4 = vpop.f32.mrb[24].mxu1  ;;  %v1840_v14 = vld [vmem:[#allocation3 + $0x1f8] sm:$0xff] }
 0x20a   : > { %2901 = vst.msk [vmem:[%s4018_s14 + $0x110] sm:$0xff] %vm1141_vm15, %v2564_v2  ;;  %v2565_v32 = vadd.f32 %v4011_v44, %v2533_v29  ;;  %v2436_v7 = vld [vmem:[#allocation3 + $0xb0] sm:$0xff]  ;;  %2399 = vst.msk [vmem:[#allocation3 + $0x1a8] sm:$0xff] %vm1141_vm15, %v3183_v19  ;;  %v3153_v51 = vadd.f32 %v1712_v60, %v1230_v57  ;;  %v3055_v63 = vpop.f32.mrb[26].mxu0  ;;  %v3184_v6 = vadd.f32 %v3122_v4, %v1835_v34  ;;  %v2315_v17 = vpop.f32.mrb[25].mxu1  ;;  %v1838_v29 = vld [vmem:[#allocation3 + $0x1e8] sm:$0xff] }
 0x20b   : > { %2904 = vst.msk [vmem:[%s4018_s14 + $0x138] sm:$0xff] %vm1141_vm15, %v2567_v45  ;;  %v2474_v41 = vadd.f32 %v4011_v44, %v2436_v7  ;;  %v2434_v53 = vld [vmem:[#allocation3 + $0xa0] sm:$0xff]  ;;  %1802 = vst.msk [vmem:[#allocation3 + $0xd0] sm:$0xff] %vm1141_vm15, %v3152_v61  ;;  %v3154_v0 = vadd.f32 %v3055_v63, %v1233_v3  ;;  %v1715_v47 = vpop.f32.mrb[27].mxu0  ;;  %v3185_v16 = vadd.f32 %v2315_v17, %v1833_v58  ;;  %v3123_v10 = vpop.f32.mrb[26].mxu1 }
 0x20c   : > { %2902 = vst.msk [vmem:[%s4018_s14 + $0x118] sm:$0xff] %vm1141_vm15, %v2565_v32  ;;  %v2472_v23 = vadd.f32 %v4011_v44, %v2434_v53  ;;  %v2437_v1 = vld [vmem:[#allocation3 + $0xb8] sm:$0xff]  ;;  %1800 = vst.msk [vmem:[#allocation3 + $0xc0] sm:$0xff] %vm1141_vm15, %v3153_v51  ;;  %v3155_v39 = vadd.f32 %v1715_v47, %v1231_v62  ;;  %v3186_v21 = vadd.f32 %v3123_v10, %v1836_v48  ;;  %v2318_v22 = vpop.f32.mrb[27].mxu1 }
 0x20d   : > { %2506 = vst.msk [vmem:[%s4018_s14 + $0x160] sm:$0xff] %vm1141_vm15, %v2474_v41  ;;  %v2475_v24 = vadd.f32 %v4011_v44, %v2437_v1  ;;  %v2435_v59 = vld [vmem:[#allocation3 + $0xa8] sm:$0xff]  ;;  %1803 = vst.msk [vmem:[#allocation3 + $0xd8] sm:$0xff] %vm1141_vm15, %v3154_v0  ;;  %v3187_v20 = vadd.f32 %v2318_v22, %v1834_v8 }
 0x20e   : > { %2504 = vst.msk [vmem:[%s4018_s14 + $0x140] sm:$0xff] %vm1141_vm15, %v2472_v23  ;;  %v2473_v9 = vadd.f32 %v4011_v44, %v2435_v59  ;;  %v2538_v55 = vld [vmem:[#allocation3 + $0x1b0] sm:$0xff]  ;;  %1801 = vst.msk [vmem:[#allocation3 + $0xc8] sm:$0xff] %vm1141_vm15, %v3155_v39 }
 0x20f   : > { %2507 = vst.msk [vmem:[%s4018_s14 + $0x168] sm:$0xff] %vm1141_vm15, %v2475_v24  ;;  %v2570_v11 = vadd.f32 %v4011_v44, %v2538_v55  ;;  %v2536_v12 = vld [vmem:[#allocation3 + $0x1a0] sm:$0xff]  ;;  %2404 = vst.msk [vmem:[#allocation3 + $0x1d0] sm:$0xff] %vm1141_vm15, %v3184_v6 }
 0x210   : > { %2505 = vst.msk [vmem:[%s4018_s14 + $0x148] sm:$0xff] %vm1141_vm15, %v2473_v9  ;;  %v2568_v25 = vadd.f32 %v4011_v44, %v2536_v12  ;;  %v2539_v26 = vld [vmem:[#allocation3 + $0x1b8] sm:$0xff]  ;;  %2402 = vst.msk [vmem:[#allocation3 + $0x1c0] sm:$0xff] %vm1141_vm15, %v3185_v16  ;;  %v3058_v30 = vpop.f32.mrb[28].mxu0 }
 0x211   : > { %2907 = vst.msk [vmem:[%s4018_s14 + $0x170] sm:$0xff] %vm1141_vm15, %v2570_v11  ;;  %v2571_v33 = vadd.f32 %v4011_v44, %v2539_v26  ;;  %v2537_v28 = vld [vmem:[#allocation3 + $0x1a8] sm:$0xff]  ;;  %2405 = vst.msk [vmem:[#allocation3 + $0x1d8] sm:$0xff] %vm1141_vm15, %v3186_v21  ;;  %v3156_v50 = vadd.f32 %v3058_v30, %v1236_v42  ;;  %v1728_v35 = vpop.f32.mrb[29].mxu0  ;;  %v3126_v2 = vpop.f32.mrb[28].mxu1 }
 0x212   : > { %2905 = vst.msk [vmem:[%s4018_s14 + $0x150] sm:$0xff] %vm1141_vm15, %v2568_v25  ;;  %v2569_v52 = vadd.f32 %v4011_v44, %v2537_v28  ;;  %v2440_v5 = vld [vmem:[#allocation3 + $0xd0] sm:$0xff]  ;;  %2403 = vst.msk [vmem:[#allocation3 + $0x1c8] sm:$0xff] %vm1141_vm15, %v3187_v20  ;;  %v3157_v37 = vadd.f32 %v1728_v35, %v1234_v27  ;;  %v3059_v13 = vpop.f32.mrb[30].mxu0  ;;  %v3188_v3 = vadd.f32 %v3126_v2, %v1839_v38  ;;  %v2331_v45 = vpop.f32.mrb[29].mxu1 }
 0x213   : > { %2908 = vst.msk [vmem:[%s4018_s14 + $0x178] sm:$0xff] %vm1141_vm15, %v2571_v33  ;;  %v2478_v40 = vadd.f32 %v4011_v44, %v2440_v5  ;;  %v2438_v43 = vld [vmem:[#allocation3 + $0xc0] sm:$0xff]  ;;  %1806 = vst.msk [vmem:[#allocation3 + $0xf0] sm:$0xff] %vm1141_vm15, %v3156_v50  ;;  %v3158_v46 = vadd.f32 %v3059_v13, %v1237_v54  ;;  %v1731_v18 = vpop.f32.mrb[31].mxu0  ;;  %v3189_v62 = vadd.f32 %v2331_v45, %v1837_v31  ;;  %v3127_v32 = vpop.f32.mrb[30].mxu1 }
 0x214   : > { %2906 = vst.msk [vmem:[%s4018_s14 + $0x158] sm:$0xff] %vm1141_vm15, %v2569_v52  ;;  %v2476_v49 = vadd.f32 %v4011_v44, %v2438_v43  ;;  %v2441_v56 = vld [vmem:[#allocation3 + $0xd8] sm:$0xff]  ;;  %1804 = vst.msk [vmem:[#allocation3 + $0xe0] sm:$0xff] %vm1141_vm15, %v3157_v37  ;;  %v3159_v57 = vadd.f32 %v1731_v18, %v1235_v36  ;;  %v3190_v63 = vadd.f32 %v3127_v32, %v1840_v14  ;;  %v2334_v34 = vpop.f32.mrb[31].mxu1 }
 0x215   : > { %2510 = vst.msk [vmem:[%s4018_s14 + $0x1a0] sm:$0xff] %vm1141_vm15, %v2478_v40  ;;  %v2479_v19 = vadd.f32 %v4011_v44, %v2441_v56  ;;  %v2439_v15 = vld [vmem:[#allocation3 + $0xc8] sm:$0xff]  ;;  %1807 = vst.msk [vmem:[#allocation3 + $0xf8] sm:$0xff] %vm1141_vm15, %v3158_v46  ;;  %v3191_v0 = vadd.f32 %v2334_v34, %v1838_v29 }
 0x216   : > { %2508 = vst.msk [vmem:[%s4018_s14 + $0x180] sm:$0xff] %vm1141_vm15, %v2476_v49  ;;  %v2477_v61 = vadd.f32 %v4011_v44, %v2439_v15  ;;  %v2542_v60 = vld [vmem:[#allocation3 + $0x1d0] sm:$0xff]  ;;  %1805 = vst.msk [vmem:[#allocation3 + $0xe8] sm:$0xff] %vm1141_vm15, %v3159_v57 }
 0x217   : > { %2511 = vst.msk [vmem:[%s4018_s14 + $0x1a8] sm:$0xff] %vm1141_vm15, %v2479_v19  ;;  %v2574_v7 = vadd.f32 %v4011_v44, %v2542_v60  ;;  %v2540_v51 = vld [vmem:[#allocation3 + $0x1c0] sm:$0xff]  ;;  %2408 = vst.msk [vmem:[#allocation3 + $0x1f0] sm:$0xff] %vm1141_vm15, %v3188_v3 }
 0x218   : > { %2509 = vst.msk [vmem:[%s4018_s14 + $0x188] sm:$0xff] %vm1141_vm15, %v2477_v61  ;;  %v2572_v41 = vadd.f32 %v4011_v44, %v2540_v51  ;;  %v2543_v53 = vld [vmem:[#allocation3 + $0x1d8] sm:$0xff]  ;;  %2406 = vst.msk [vmem:[#allocation3 + $0x1e0] sm:$0xff] %vm1141_vm15, %v3189_v62 }
 0x219   : > { %2911 = vst.msk [vmem:[%s4018_s14 + $0x1b0] sm:$0xff] %vm1141_vm15, %v2574_v7  ;;  %v2575_v47 = vadd.f32 %v4011_v44, %v2543_v53  ;;  %v2541_v58 = vld [vmem:[#allocation3 + $0x1c8] sm:$0xff]  ;;  %2409 = vst.msk [vmem:[#allocation3 + $0x1f8] sm:$0xff] %vm1141_vm15, %v3190_v63 }
 0x21a   : > { %2909 = vst.msk [vmem:[%s4018_s14 + $0x190] sm:$0xff] %vm1141_vm15, %v2572_v41  ;;  %v2573_v23 = vadd.f32 %v4011_v44, %v2541_v58  ;;  %v2444_v1 = vld [vmem:[#allocation3 + $0xf0] sm:$0xff]  ;;  %2407 = vst.msk [vmem:[#allocation3 + $0x1e8] sm:$0xff] %vm1141_vm15, %v3191_v0 }
 0x21b   : > { %2912 = vst.msk [vmem:[%s4018_s14 + $0x1b8] sm:$0xff] %vm1141_vm15, %v2575_v47  ;;  %v2482_v39 = vadd.f32 %v4011_v44, %v2444_v1  ;;  %v2442_v4 = vld [vmem:[#allocation3 + $0xe0] sm:$0xff] }
 0x21c   : > { %2910 = vst.msk [vmem:[%s4018_s14 + $0x198] sm:$0xff] %vm1141_vm15, %v2573_v23  ;;  %v2480_v48 = vadd.f32 %v4011_v44, %v2442_v4  ;;  %v2445_v24 = vld [vmem:[#allocation3 + $0xf8] sm:$0xff] }
 0x21d   : > { %2514 = vst.msk [vmem:[%s4018_s14 + $0x1e0] sm:$0xff] %vm1141_vm15, %v2482_v39  ;;  %v2483_v59 = vadd.f32 %v4011_v44, %v2445_v24  ;;  %v2443_v6 = vld [vmem:[#allocation3 + $0xe8] sm:$0xff] }
 0x21e   : > { %2512 = vst.msk [vmem:[%s4018_s14 + $0x1c0] sm:$0xff] %vm1141_vm15, %v2480_v48  ;;  %v2481_v17 = vadd.f32 %v4011_v44, %v2443_v6  ;;  %v2546_v8 = vld [vmem:[#allocation3 + $0x1f0] sm:$0xff] }
 0x21f   : > { %2515 = vst.msk [vmem:[%s4018_s14 + $0x1e8] sm:$0xff] %vm1141_vm15, %v2483_v59  ;;  %v2578_v9 = vadd.f32 %v4011_v44, %v2546_v8  ;;  %v2544_v55 = vld [vmem:[#allocation3 + $0x1e0] sm:$0xff] }
 0x220   : > { %2513 = vst.msk [vmem:[%s4018_s14 + $0x1c8] sm:$0xff] %vm1141_vm15, %v2481_v17  ;;  %v2576_v16 = vadd.f32 %v4011_v44, %v2544_v55  ;;  %v2547_v10 = vld [vmem:[#allocation3 + $0x1f8] sm:$0xff] }
 0x221   : > { %2915 = vst.msk [vmem:[%s4018_s14 + $0x1f0] sm:$0xff] %vm1141_vm15, %v2578_v9  ;;  %v2579_v42 = vadd.f32 %v4011_v44, %v2547_v10  ;;  %v2545_v11 = vld [vmem:[#allocation3 + $0x1e8] sm:$0xff] }
 0x222   : > { %2913 = vst.msk [vmem:[%s4018_s14 + $0x1d0] sm:$0xff] %vm1141_vm15, %v2576_v16  ;;  %v2577_v12 = vadd.f32 %v4011_v44, %v2545_v11 }
 0x223   : > { %2916 = vst.msk [vmem:[%s4018_s14 + $0x1f8] sm:$0xff] %vm1141_vm15, %v2579_v42 }
 0x224   : > { %2914 = vst.msk [vmem:[%s4018_s14 + $0x1d8] sm:$0xff] %vm1141_vm15, %v2577_v12 }
 0x225 PF: > { %s15_s20 = sadd.s32 1, %s3330_s20   ;;  %s4292_s18 = smov %s3326_s19 }
 0x226   : > { %p12_p5 = scmp.ge.s32.totalorder %s15_s20, 4   ;;  %s4293_s19 = smov %s4295_s1 }
 0x228   :  { %14 = sbr.rel (!%p12_p5) target bundleno = 2 (0x2), region = 112 }

</bundles_post_ra>
